<compile_context>
chip_gen: v5e
topology: v5e:2x2
jax: 0.10.0
libtpu: 0.0.40
codegen_flags: <defaults>
</compile_context>

<pallas_src>
import jax
import jax.numpy as jnp
from jax.experimental import pallas as pl
from jax.experimental.pallas import tpu as pltpu


def _answer_scoring_kernel(tail_ref, x_ref, mask_ref, wa_ref, ba_ref, va_ref,
                           w1_ref, b1_ref, w2_ref, ha_ref, hb_ref,
                           ent_ref, biasn_ref,
                           out_ref,
                           res_sc, loss_sc):
    n = pl.program_id(1)
    nt = pl.num_programs(1)

    # ---- per-batch-tile prologue: only on the first entity tile ----
    @pl.when(n == 0)
    def _prologue():
        x = x_ref[...]                                                 # (TB, L, D)
        mask = mask_ref[...]                                           # (TB, L, 1)
        tb, seq, d = x.shape

        # Batched additive attention: (TB*L, D) x (D, A) on the MXU.
        xf = x.reshape(tb * seq, d)
        u = jnp.tanh(jnp.dot(xf, wa_ref[...],
                             preferred_element_type=jnp.float32)
                     + ba_ref[...])                                    # (TB*L, A)
        u3 = u.reshape(tb, seq, u.shape[-1])                           # (TB, L, A)
        # attention scores per token: lane-broadcast multiply + lane reduce
        s = jnp.sum(u3 * va_ref[...], axis=-1, keepdims=True)          # (TB, L, 1)

        # masked softmax over the sequence (sublane axis)
        s = jnp.where(mask > 0.0, s, -1e30)
        m = jnp.max(s, axis=1, keepdims=True)                          # (TB, 1, 1)
        p = jnp.exp(s - m) * mask
        denom = jnp.maximum(jnp.sum(p, axis=1, keepdims=True), 1e-30)  # all-pad guard
        alpha = p / denom                                              # (TB, L, 1)
        pooled = jnp.sum(alpha * x, axis=1)                            # (TB, D)

        # fc_lstm2hidden (+bias, ReLU) and fc_hidden2relation (no bias, fused re|im)
        hidden = jnp.maximum(
            jnp.dot(pooled, w1_ref[...], preferred_element_type=jnp.float32)
            + b1_ref[...], 0.0)                                        # (TB, F)
        rel = jnp.dot(hidden, w2_ref[...],
                      preferred_element_type=jnp.float32)              # (TB, 2R)=[re|im]

        # fused complex rotation (head BN + score-BN scale folded into hA/hB):
        #   hA*rel + hB*roll(rel, R) = [s0*(re_h*re_r - im_h*im_r) |
        #                               s1*(re_h*im_r + im_h*re_r)]
        r_half = rel.shape[-1] // 2
        rel_sw = pltpu.roll(rel, shift=r_half, axis=1)                 # [im|re]
        res_sc[...] = ha_ref[...] * rel + hb_ref[...] * rel_sw         # (TB, 2R)

        loss_sc[...] = jnp.zeros_like(loss_sc)

    # ---- per entity tile: fused (TB,2R)x(2R,TN) bf16 matmul + logits-form BCE ----
    tn = ent_ref.shape[-1]
    logits = (jnp.dot(res_sc[...].astype(ent_ref.dtype), ent_ref[...],
                      preferred_element_type=jnp.float32)
              + biasn_ref[...])                                        # (TB, TN)

    # one-hot BCE-with-logits: softplus(z) - z[tail]
    col = jax.lax.broadcasted_iota(jnp.int32, logits.shape, 1) + n * tn
    is_tail = col == tail_ref[...]                                     # (TB, TN)
    softplus = jnp.maximum(logits, 0.0) + jnp.log(1.0 + jnp.exp(-jnp.abs(logits)))
    elem = softplus - jnp.where(is_tail, logits, 0.0)                  # (TB, TN)

    # lane-wide accumulation: fold TN lanes into the 128-lane accumulator with
    # vreg-aligned static slices (no per-tile cross-lane reduce).
    acc = loss_sc[...]
    lanes = loss_sc.shape[-1]
    for k in range(tn // lanes):
        acc = acc + elem[:, k * lanes:(k + 1) * lanes]
    loss_sc[...] = acc

    # ---- finalize: single cross-lane reduce + store on the last entity tile ----
    @pl.when(n == nt - 1)
    def _finalize():
        out_ref[...] = jnp.sum(loss_sc[...], axis=1, keepdims=True)    # (TB, 1)


def answer_scoring_losses(tail_idx, x, mask, wa, ba, va_row, w1, b1, w2,
                          h_a, h_b, ent_fused_t, bias_n, *, tb=8, tn=1024,
                          vmem_limit_bytes=32 * 1024 * 1024):
    B, L, D = x.shape
    A = wa.shape[1]
    F = w1.shape[1]
    two_r = w2.shape[1]
    N = ent_fused_t.shape[1]
    assert B % tb == 0 and N % tn == 0
    assert tn % 128 == 0 and two_r % 128 == 0 and D % 128 == 0

    grid_spec = pltpu.PrefetchScalarGridSpec(
        num_scalar_prefetch=0,
        grid=(B // tb, N // tn),
        in_specs=[
            pl.BlockSpec((tb, 1), lambda bi, n: (bi, 0)),        # tail index (int32)
            pl.BlockSpec((tb, L, D), lambda bi, n: (bi, 0, 0)),  # x
            pl.BlockSpec((tb, L, 1), lambda bi, n: (bi, 0, 0)),  # mask
            pl.BlockSpec((D, A), lambda bi, n: (0, 0)),          # wa
            pl.BlockSpec((1, A), lambda bi, n: (0, 0)),          # ba
            pl.BlockSpec((1, A), lambda bi, n: (0, 0)),          # va (row)
            pl.BlockSpec((D, F), lambda bi, n: (0, 0)),          # w1
            pl.BlockSpec((1, F), lambda bi, n: (0, 0)),          # b1
            pl.BlockSpec((F, two_r), lambda bi, n: (0, 0)),      # w2 fused [re|im]
            pl.BlockSpec((tb, two_r), lambda bi, n: (bi, 0)),    # hA (BN folded)
            pl.BlockSpec((tb, two_r), lambda bi, n: (bi, 0)),    # hB (BN folded)
            pl.BlockSpec((two_r, tn), lambda bi, n: (0, n)),     # fused ent table (bf16)
            pl.BlockSpec((1, tn), lambda bi, n: (0, n)),         # bias_n (BN shift)
        ],
        out_specs=pl.BlockSpec((tb, 1), lambda bi, n: (bi, 0)),
        scratch_shapes=[pltpu.VMEM((tb, two_r), jnp.float32),    # fused re|im score
                        pltpu.VMEM((tb, 128), jnp.float32)],     # lane-wide loss acc
    )

    out = pl.pallas_call(
        _answer_scoring_kernel,
        out_shape=jax.ShapeDtypeStruct((B, 1), jnp.float32),
        grid_spec=grid_spec,
        compiler_params=pltpu.CompilerParams(
            dimension_semantics=("parallel", "arbitrary"),
            vmem_limit_bytes=vmem_limit_bytes),
    )(tail_idx, x, mask, wa, ba, va_row, w1, b1, w2,
      h_a, h_b, ent_fused_t, bias_n)
    return out.reshape(B)


def _xavier(key, fan_in, fan_out):
    std = (2.0 / (fan_in + fan_out)) ** 0.5
    return std * jax.random.normal(key, (fan_in, fan_out), dtype=jnp.float32)


def _bn_affine(gamma, beta, mean, var, R, eps=1e-5):
    """Fold eval-mode BatchNorm1d(2) into per-feature scale/shift of shape (1, 2R)."""
    scale = gamma / jnp.sqrt(var + eps)            # (2,)
    shift = beta - mean * scale                    # (2,)
    scale_v = jnp.concatenate([jnp.full((R,), scale[0]), jnp.full((R,), scale[1])])
    shift_v = jnp.concatenate([jnp.full((R,), shift[0]), jnp.full((R,), shift[1])])
    return scale_v[None, :].astype(jnp.float32), shift_v[None, :].astype(jnp.float32)


if __name__ == "__main__":
    # Small but 128-lane-aligned shapes consistent with the module.
    B = 16                    # batch of questions
    TB = 8                    # questions per grid step (batch tile)
    L = 8                     # max_sent_len
    vocab_size = 64
    hidden_dim = 64
    D = 2 * hidden_dim        # 128 == word_dim == embedding_dim == 2*hidden
    A = 4 * hidden_dim        # 256 attention_dim
    F = 128                   # fc_hidden_dim
    R = 64                    # relation_dim
    ent_dim = 2 * R           # 128
    N = 2048                  # num_entities
    TN = 1024                 # entity tile (lane-dense, amortises step overhead)

    key = jax.random.PRNGKey(0)
    ks = jax.random.split(key, 10)

    # Parameters (deterministic).  The entity table is rounded to
    # bf16-representable values so the kernel's bf16 streaming is exact.
    word_emb_table = 0.1 * jax.random.normal(ks[0], (vocab_size, D), dtype=jnp.float32)
    entity_emb_table = (0.1 * jax.random.normal(ks[1], (N, ent_dim), dtype=jnp.float32)
                        ).astype(jnp.bfloat16).astype(jnp.float32)
    wa = _xavier(ks[2], D, A)
    ba = jnp.zeros((1, A), dtype=jnp.float32)
    va = _xavier(ks[3], A, 1)
    w1 = _xavier(ks[4], D, F)                       # fc_lstm2hidden (transposed)
    b1 = jnp.zeros((1, F), dtype=jnp.float32)
    w2 = _xavier(ks[5], F, ent_dim)                 # fc_hidden2relation (transposed)

    # Eval-mode BN stats (stand-ins for head_bn_filepath / score_bn_filepath).
    hscale_vec, hshift_vec = _bn_affine(jnp.array([1.0, 0.9]), jnp.array([0.05, -0.05]),
                                        jnp.array([0.10, -0.10]), jnp.array([1.2, 0.8]), R)
    sscale_vec, sshift_vec = _bn_affine(jnp.array([0.95, 1.05]), jnp.array([0.02, -0.02]),
                                        jnp.array([0.05, 0.03]), jnp.array([1.1, 0.9]), R)

    # Inputs.
    questions = jax.random.randint(ks[6], (B, L), 0, vocab_size)
    q_lens = (jnp.arange(B, dtype=jnp.int32) % 6) + 3          # lengths in [3, 8]
    head_entities = jax.random.randint(ks[7], (B,), 0, N)
    tail_idx = jax.random.randint(ks[8], (B,), 0, N).astype(jnp.int32)

    # ---- JAX glue: gathers, mask, BN folding, layout plumbing ----
    x_seq = word_emb_table[questions]                                  # (B, L, D)
    mask = (jnp.arange(L)[None, :] < q_lens[:, None]
            ).astype(jnp.float32)[..., None]                           # (B, L, 1)

    head_emb = entity_emb_table[head_entities]                         # (B, 2R)
    head_bn = head_emb * hscale_vec + hshift_vec                       # fold head BN
    h_re = head_bn[:, :R]
    h_im = head_bn[:, R:]
    s0, s1 = sscale_vec[0, 0], sscale_vec[0, R]
    t0, t1 = sshift_vec[0, 0], sshift_vec[0, R]
    # Head vectors pre-arranged for the fused in-kernel rotation; the score-BN
    # scale is folded here so the entity table stays exactly bf16.
    h_a = jnp.concatenate([s0 * h_re, s1 * h_re], axis=1)              # (B, 2R)
    h_b = jnp.concatenate([-s0 * h_im, s1 * h_im], axis=1)             # (B, 2R)

    ent_re = entity_emb_table[:, :R]
    ent_im = entity_emb_table[:, R:]
    ent_fused_t = jnp.concatenate([ent_re.T, ent_im.T],
                                  axis=0).astype(jnp.bfloat16)         # (2R, N) bf16
    bias_n = (t0 * ent_re.sum(axis=1) + t1 * ent_im.sum(axis=1))[None, :]  # (1, N)

    va_row = va.reshape(1, A)
    tail_col = tail_idx.reshape(B, 1)

    losses = answer_scoring_losses(tail_col, x_seq, mask, wa, ba, va_row, w1, b1, w2,
                                   h_a, h_b, ent_fused_t, bias_n, tb=TB, tn=TN)
    losses = jax.block_until_ready(losses)

    # ---- Pure-JAX reference (original, unfolded math: sigmoid + clamped-log BCE) ----
    def ref_losses():
        outs = []
        for b in range(B):
            x = x_seq[b]
            msk = mask[b]
            u = jnp.tanh(x @ wa + ba)
            s = jnp.where(msk > 0, u @ va, -1e30)
            p = jnp.exp(s - s.max(0, keepdims=True)) * msk
            alpha = p / p.sum(0, keepdims=True)
            pooled = (alpha * x).sum(0, keepdims=True)
            hid = jnp.maximum(pooled @ w1 + b1, 0.0)
            rel = hid @ w2
            head = head_emb[b:b + 1] * hscale_vec + hshift_vec
            re_h, im_h = head[:, :R], head[:, R:]
            re_r, im_r = rel[:, :R], rel[:, R:]
            re_s = re_h * re_r - im_h * im_r
            im_s = re_h * im_r + im_h * re_r
            sc = jnp.concatenate([re_s, im_s], 1) * sscale_vec + sshift_vec
            re_s, im_s = sc[:, :R], sc[:, R:]
            logits = re_s @ ent_re.T + im_s @ ent_im.T
            pred = jax.nn.sigmoid(logits)
            yb = jax.nn.one_hot(tail_idx[b], N, dtype=jnp.float32)[None, :]
            outs.append(-jnp.sum(yb * jnp.maximum(jnp.log(pred), -100.0)
                                 + (1 - yb) * jnp.maximum(jnp.log(1.0 - pred), -100.0)))
        return jnp.stack(outs)

    ref = ref_losses()
    assert jnp.allclose(losses, ref, rtol=1e-3, atol=0.1), (losses, ref)
    print("KERNEL_OK")
</pallas_src>

<mosaic_0001>
module attributes {stable_mosaic.version = 11 : i64} {
  func.func @_answer_scoring_kernel(%arg0: i32, %arg1: i32, %arg2: memref<8x1xi32, #tpu.memory_space<vmem>>, %arg3: memref<8x8x128xf32, #tpu.memory_space<vmem>>, %arg4: memref<8x8x1xf32, #tpu.memory_space<vmem>>, %arg5: memref<128x256xf32, #tpu.memory_space<vmem>>, %arg6: memref<1x256xf32, #tpu.memory_space<vmem>>, %arg7: memref<1x256xf32, #tpu.memory_space<vmem>>, %arg8: memref<128x128xf32, #tpu.memory_space<vmem>>, %arg9: memref<1x128xf32, #tpu.memory_space<vmem>>, %arg10: memref<128x128xf32, #tpu.memory_space<vmem>>, %arg11: memref<8x128xf32, #tpu.memory_space<vmem>>, %arg12: memref<8x128xf32, #tpu.memory_space<vmem>>, %arg13: memref<128x1024xbf16, #tpu.memory_space<vmem>>, %arg14: memref<1x1024xf32, #tpu.memory_space<vmem>>, %arg15: memref<8x1xf32, #tpu.memory_space<vmem>>, %arg16: memref<8x128xf32, #tpu.memory_space<vmem>>, %arg17: memref<8x128xf32, #tpu.memory_space<vmem>>) attributes {dimension_semantics = [#tpu.dimension_semantics<parallel>, #tpu.dimension_semantics<arbitrary>], iteration_bounds = array<i64: 2, 2>, scalar_prefetch = 0 : i64, scratch_operands = 2 : i64, tpu.core_type = #tpu.core_type<tc>, window_params = [{transform_indices = @transform_0, window_bounds = array<i64: 8, 1>}, {transform_indices = @transform_1, window_bounds = array<i64: 8, 8, 128>}, {transform_indices = @transform_2, window_bounds = array<i64: 8, 8, 1>}, {pipeline_mode = #tpu.pipeline_mode<synchronous>, transform_indices = @transform_3, window_bounds = array<i64: 128, 256>}, {pipeline_mode = #tpu.pipeline_mode<synchronous>, transform_indices = @transform_4, window_bounds = array<i64: 1, 256>}, {pipeline_mode = #tpu.pipeline_mode<synchronous>, transform_indices = @transform_5, window_bounds = array<i64: 1, 256>}, {pipeline_mode = #tpu.pipeline_mode<synchronous>, transform_indices = @transform_6, window_bounds = array<i64: 128, 128>}, {pipeline_mode = #tpu.pipeline_mode<synchronous>, transform_indices = @transform_7, window_bounds = array<i64: 1, 128>}, {pipeline_mode = #tpu.pipeline_mode<synchronous>, transform_indices = @transform_8, window_bounds = array<i64: 128, 128>}, {transform_indices = @transform_9, window_bounds = array<i64: 8, 128>}, {transform_indices = @transform_10, window_bounds = array<i64: 8, 128>}, {transform_indices = @transform_11, window_bounds = array<i64: 128, 1024>}, {transform_indices = @transform_12, window_bounds = array<i64: 1, 1024>}, {transform_indices = @transform_13, window_bounds = array<i64: 8, 1>}]} {
    %c0_i32 = arith.constant 0 : i32
    %0 = arith.cmpi eq, %arg1, %c0_i32 : i32
    %1 = arith.extui %0 : i1 to i32
    %c0_i32_0 = arith.constant 0 : i32
    %2 = arith.cmpi ne, %1, %c0_i32_0 : i32
    scf.if %2 {
      %c0_17 = arith.constant 0 : index
      %c0_18 = arith.constant 0 : index
      %c0_19 = arith.constant 0 : index
      %51 = vector.load %arg3[%c0_17, %c0_18, %c0_19] : memref<8x8x128xf32, #tpu.memory_space<vmem>>, vector<8x8x128xf32>
      %c0_20 = arith.constant 0 : index
      %c0_21 = arith.constant 0 : index
      %c0_22 = arith.constant 0 : index
      %52 = vector.load %arg4[%c0_20, %c0_21, %c0_22] : memref<8x8x1xf32, #tpu.memory_space<vmem>>, vector<8x8x1xf32>
      %53 = vector.shape_cast %51 : vector<8x8x128xf32> to vector<64x128xf32>
      %c0_23 = arith.constant 0 : index
      %c0_24 = arith.constant 0 : index
      %54 = vector.load %arg5[%c0_23, %c0_24] : memref<128x256xf32, #tpu.memory_space<vmem>>, vector<128x256xf32>
      %cst_25 = arith.constant dense<0.000000e+00> : vector<64x256xf32>
      %55 = tpu.matmul %53, %54, %cst_25 {dimension_numbers = #tpu.dot_dimension_numbers<[1], [0], [0], [1], [0, 0, 1, 1], [], []>} : vector<64x128xf32>, vector<128x256xf32>, vector<64x256xf32> -> vector<64x256xf32>
      %c0_26 = arith.constant 0 : index
      %c0_27 = arith.constant 0 : index
      %56 = vector.load %arg6[%c0_26, %c0_27] : memref<1x256xf32, #tpu.memory_space<vmem>>, vector<1x256xf32>
      %57 = vector.broadcast %56 : vector<1x256xf32> to vector<64x256xf32>
      %58 = arith.addf %55, %57 : vector<64x256xf32>
      %59 = math.tanh %58 : vector<64x256xf32>
      %60 = vector.shape_cast %59 : vector<64x256xf32> to vector<8x8x256xf32>
      %c0_28 = arith.constant 0 : index
      %c0_29 = arith.constant 0 : index
      %61 = vector.load %arg7[%c0_28, %c0_29] : memref<1x256xf32, #tpu.memory_space<vmem>>, vector<1x256xf32>
      %62 = vector.shape_cast %61 : vector<1x256xf32> to vector<1x1x256xf32>
      %63 = vector.broadcast %62 : vector<1x1x256xf32> to vector<8x8x256xf32>
      %64 = arith.mulf %60, %63 : vector<8x8x256xf32>
      %cst_30 = arith.constant dense<0.000000e+00> : vector<8x8xf32>
      %65 = vector.multi_reduction <add>, %64, %cst_30 [2] : vector<8x8x256xf32> to vector<8x8xf32>
      %66 = vector.shape_cast %65 : vector<8x8xf32> to vector<8x8x1xf32>
      %cst_31 = arith.constant 0.000000e+00 : f32
      %67 = vector.broadcast %cst_31 : f32 to vector<8x8x1xf32>
      %68 = arith.cmpf ogt, %52, %67 : vector<8x8x1xf32>
      %cst_32 = arith.constant -1.000000e+30 : f32
      %69 = vector.broadcast %cst_32 : f32 to vector<8x8x1xf32>
      %70 = arith.select %68, %66, %69 : vector<8x8x1xi1>, vector<8x8x1xf32>
      %cst_33 = arith.constant dense<0xFF800000> : vector<8x1xf32>
      %71 = vector.multi_reduction <maximumf>, %70, %cst_33 [1] : vector<8x8x1xf32> to vector<8x1xf32>
      %72 = vector.shape_cast %71 : vector<8x1xf32> to vector<8x1x1xf32>
      %73 = vector.broadcast %72 : vector<8x1x1xf32> to vector<8x8x1xf32>
      %74 = arith.subf %70, %73 : vector<8x8x1xf32>
      %75 = math.exp %74 : vector<8x8x1xf32>
      %76 = arith.mulf %75, %52 : vector<8x8x1xf32>
      %cst_34 = arith.constant dense<0.000000e+00> : vector<8x1xf32>
      %77 = vector.multi_reduction <add>, %76, %cst_34 [1] : vector<8x8x1xf32> to vector<8x1xf32>
      %78 = vector.shape_cast %77 : vector<8x1xf32> to vector<8x1x1xf32>
      %cst_35 = arith.constant 1.000000e-30 : f32
      %79 = vector.broadcast %cst_35 : f32 to vector<8x1x1xf32>
      %80 = arith.maximumf %78, %79 : vector<8x1x1xf32>
      %81 = vector.broadcast %80 : vector<8x1x1xf32> to vector<8x8x1xf32>
      %82 = arith.divf %76, %81 : vector<8x8x1xf32>
      %83 = vector.broadcast %82 : vector<8x8x1xf32> to vector<8x8x128xf32>
      %84 = arith.mulf %83, %51 : vector<8x8x128xf32>
      %cst_36 = arith.constant dense<0.000000e+00> : vector<8x128xf32>
      %85 = vector.multi_reduction <add>, %84, %cst_36 [1] : vector<8x8x128xf32> to vector<8x128xf32>
      %c0_37 = arith.constant 0 : index
      %c0_38 = arith.constant 0 : index
      %86 = vector.load %arg8[%c0_37, %c0_38] : memref<128x128xf32, #tpu.memory_space<vmem>>, vector<128x128xf32>
      %cst_39 = arith.constant dense<0.000000e+00> : vector<8x128xf32>
      %87 = tpu.matmul %85, %86, %cst_39 {dimension_numbers = #tpu.dot_dimension_numbers<[1], [0], [0], [1], [0, 0, 1, 1], [], []>} : vector<8x128xf32>, vector<128x128xf32>, vector<8x128xf32> -> vector<8x128xf32>
      %c0_40 = arith.constant 0 : index
      %c0_41 = arith.constant 0 : index
      %88 = vector.load %arg9[%c0_40, %c0_41] : memref<1x128xf32, #tpu.memory_space<vmem>>, vector<1x128xf32>
      %89 = vector.broadcast %88 : vector<1x128xf32> to vector<8x128xf32>
      %90 = arith.addf %87, %89 : vector<8x128xf32>
      %cst_42 = arith.constant 0.000000e+00 : f32
      %91 = vector.broadcast %cst_42 : f32 to vector<8x128xf32>
      %92 = arith.maximumf %90, %91 : vector<8x128xf32>
      %c0_43 = arith.constant 0 : index
      %c0_44 = arith.constant 0 : index
      %93 = vector.load %arg10[%c0_43, %c0_44] : memref<128x128xf32, #tpu.memory_space<vmem>>, vector<128x128xf32>
      %cst_45 = arith.constant dense<0.000000e+00> : vector<8x128xf32>
      %94 = tpu.matmul %92, %93, %cst_45 {dimension_numbers = #tpu.dot_dimension_numbers<[1], [0], [0], [1], [0, 0, 1, 1], [], []>} : vector<8x128xf32>, vector<128x128xf32>, vector<8x128xf32> -> vector<8x128xf32>
      %c64_i32 = arith.constant 64 : i32
      %95 = tpu.dynamic_rotate %94 by %c64_i32 dim 1 : vector<8x128xf32>, i32 -> vector<8x128xf32>
      %c0_46 = arith.constant 0 : index
      %c0_47 = arith.constant 0 : index
      %96 = vector.load %arg11[%c0_46, %c0_47] : memref<8x128xf32, #tpu.memory_space<vmem>>, vector<8x128xf32>
      %97 = arith.mulf %96, %94 : vector<8x128xf32>
      %c0_48 = arith.constant 0 : index
      %c0_49 = arith.constant 0 : index
      %98 = vector.load %arg12[%c0_48, %c0_49] : memref<8x128xf32, #tpu.memory_space<vmem>>, vector<8x128xf32>
      %99 = arith.mulf %98, %95 : vector<8x128xf32>
      %100 = arith.addf %97, %99 : vector<8x128xf32>
      %c0_50 = arith.constant 0 : index
      %c0_51 = arith.constant 0 : index
      %101 = vector.load %arg16[%c0_50, %c0_51] : memref<8x128xf32, #tpu.memory_space<vmem>>, vector<8x128xf32>
      tpu.vector_store %arg16[%c0_50, %c0_51], %100 {strides = array<i32>} : memref<8x128xf32, #tpu.memory_space<vmem>>, vector<8x128xf32>,
      %cst_52 = arith.constant 0.000000e+00 : f32
      %102 = vector.broadcast %cst_52 : f32 to vector<8x128xf32>
      %c0_53 = arith.constant 0 : index
      %c0_54 = arith.constant 0 : index
      %103 = vector.load %arg17[%c0_53, %c0_54] : memref<8x128xf32, #tpu.memory_space<vmem>>, vector<8x128xf32>
      tpu.vector_store %arg17[%c0_53, %c0_54], %102 {strides = array<i32>} : memref<8x128xf32, #tpu.memory_space<vmem>>, vector<8x128xf32>,
    } else {
    }
    %c0 = arith.constant 0 : index
    %c0_1 = arith.constant 0 : index
    %3 = vector.load %arg16[%c0, %c0_1] : memref<8x128xf32, #tpu.memory_space<vmem>>, vector<8x128xf32>
    %4 = arith.truncf %3 : vector<8x128xf32> to vector<8x128xbf16>
    %c0_2 = arith.constant 0 : index
    %c0_3 = arith.constant 0 : index
    %5 = vector.load %arg13[%c0_2, %c0_3] : memref<128x1024xbf16, #tpu.memory_space<vmem>>, vector<128x1024xbf16>
    %cst = arith.constant dense<0.000000e+00> : vector<8x1024xf32>
    %6 = tpu.matmul %4, %5, %cst {dimension_numbers = #tpu.dot_dimension_numbers<[1], [0], [0], [1], [0, 0, 1, 1], [], []>} : vector<8x128xbf16>, vector<128x1024xbf16>, vector<8x1024xf32> -> vector<8x1024xf32>
    %c0_4 = arith.constant 0 : index
    %c0_5 = arith.constant 0 : index
    %7 = vector.load %arg14[%c0_4, %c0_5] : memref<1x1024xf32, #tpu.memory_space<vmem>>, vector<1x1024xf32>
    %8 = vector.broadcast %7 : vector<1x1024xf32> to vector<8x1024xf32>
    %9 = arith.addf %6, %8 : vector<8x1024xf32>
    %10 = tpu.iota {dimensions = array<i32: 1>} : vector<8x1024xi32>
    %c1024_i32 = arith.constant 1024 : i32
    %11 = arith.muli %arg1, %c1024_i32 : i32
    %12 = vector.broadcast %11 : i32 to vector<8x1024xi32>
    %13 = arith.addi %10, %12 : vector<8x1024xi32>
    %c0_6 = arith.constant 0 : index
    %c0_7 = arith.constant 0 : index
    %14 = vector.load %arg2[%c0_6, %c0_7] : memref<8x1xi32, #tpu.memory_space<vmem>>, vector<8x1xi32>
    %15 = vector.broadcast %14 : vector<8x1xi32> to vector<8x1024xi32>
    %16 = arith.cmpi eq, %13, %15 : vector<8x1024xi32>
    %cst_8 = arith.constant 0.000000e+00 : f32
    %17 = vector.broadcast %cst_8 : f32 to vector<8x1024xf32>
    %18 = arith.maximumf %9, %17 : vector<8x1024xf32>
    %19 = math.absf %9 : vector<8x1024xf32>
    %cst_9 = arith.constant 0.000000e+00 : f32
    %20 = vector.broadcast %cst_9 : f32 to vector<8x1024xf32>
    %21 = arith.subf %20, %19 : vector<8x1024xf32>
    %22 = math.exp %21 : vector<8x1024xf32>
    %cst_10 = arith.constant 1.000000e+00 : f32
    %23 = vector.broadcast %cst_10 : f32 to vector<8x1024xf32>
    %24 = arith.addf %23, %22 : vector<8x1024xf32>
    %25 = math.log %24 : vector<8x1024xf32>
    %26 = arith.addf %18, %25 : vector<8x1024xf32>
    %cst_11 = arith.constant 0.000000e+00 : f32
    %27 = vector.broadcast %cst_11 : f32 to vector<8x1024xf32>
    %28 = arith.select %16, %9, %27 : vector<8x1024xi1>, vector<8x1024xf32>
    %29 = arith.subf %26, %28 : vector<8x1024xf32>
    %c0_12 = arith.constant 0 : index
    %c0_13 = arith.constant 0 : index
    %30 = vector.load %arg17[%c0_12, %c0_13] : memref<8x128xf32, #tpu.memory_space<vmem>>, vector<8x128xf32>
    %31 = vector.extract_strided_slice %29 {offsets = [0, 0], sizes = [8, 128], strides = [1, 1]} : vector<8x1024xf32> to vector<8x128xf32>
    %32 = arith.addf %30, %31 : vector<8x128xf32>
    %33 = vector.extract_strided_slice %29 {offsets = [0, 128], sizes = [8, 128], strides = [1, 1]} : vector<8x1024xf32> to vector<8x128xf32>
    %34 = arith.addf %32, %33 : vector<8x128xf32>
    %35 = vector.extract_strided_slice %29 {offsets = [0, 256], sizes = [8, 128], strides = [1, 1]} : vector<8x1024xf32> to vector<8x128xf32>
    %36 = arith.addf %34, %35 : vector<8x128xf32>
    %37 = vector.extract_strided_slice %29 {offsets = [0, 384], sizes = [8, 128], strides = [1, 1]} : vector<8x1024xf32> to vector<8x128xf32>
    %38 = arith.addf %36, %37 : vector<8x128xf32>
    %39 = vector.extract_strided_slice %29 {offsets = [0, 512], sizes = [8, 128], strides = [1, 1]} : vector<8x1024xf32> to vector<8x128xf32>
    %40 = arith.addf %38, %39 : vector<8x128xf32>
    %41 = vector.extract_strided_slice %29 {offsets = [0, 640], sizes = [8, 128], strides = [1, 1]} : vector<8x1024xf32> to vector<8x128xf32>
    %42 = arith.addf %40, %41 : vector<8x128xf32>
    %43 = vector.extract_strided_slice %29 {offsets = [0, 768], sizes = [8, 128], strides = [1, 1]} : vector<8x1024xf32> to vector<8x128xf32>
    %44 = arith.addf %42, %43 : vector<8x128xf32>
    %45 = vector.extract_strided_slice %29 {offsets = [0, 896], sizes = [8, 128], strides = [1, 1]} : vector<8x1024xf32> to vector<8x128xf32>
    %46 = arith.addf %44, %45 : vector<8x128xf32>
    %c0_14 = arith.constant 0 : index
    %c0_15 = arith.constant 0 : index
    %47 = vector.load %arg17[%c0_14, %c0_15] : memref<8x128xf32, #tpu.memory_space<vmem>>, vector<8x128xf32>
    tpu.vector_store %arg17[%c0_14, %c0_15], %46 {strides = array<i32>} : memref<8x128xf32, #tpu.memory_space<vmem>>, vector<8x128xf32>,
    %c1_i32 = arith.constant 1 : i32
    %48 = arith.cmpi eq, %arg1, %c1_i32 : i32
    %49 = arith.extui %48 : i1 to i32
    %c0_i32_16 = arith.constant 0 : i32
    %50 = arith.cmpi ne, %49, %c0_i32_16 : i32
    scf.if %50 {
      %c0_17 = arith.constant 0 : index
      %c0_18 = arith.constant 0 : index
      %51 = vector.load %arg17[%c0_17, %c0_18] : memref<8x128xf32, #tpu.memory_space<vmem>>, vector<8x128xf32>
      %cst_19 = arith.constant dense<0.000000e+00> : vector<8xf32>
      %52 = vector.multi_reduction <add>, %51, %cst_19 [1] : vector<8x128xf32> to vector<8xf32>
      %53 = vector.shape_cast %52 : vector<8xf32> to vector<8x1xf32>
      %c0_20 = arith.constant 0 : index
      %c0_21 = arith.constant 0 : index
      %54 = vector.load %arg15[%c0_20, %c0_21] : memref<8x1xf32, #tpu.memory_space<vmem>>, vector<8x1xf32>
      tpu.vector_store %arg15[%c0_20, %c0_21], %53 {strides = array<i32>} : memref<8x1xf32, #tpu.memory_space<vmem>>, vector<8x1xf32>,
    } else {
    }
    return
  }
  func.func @transform_0(%arg0: i32, %arg1: i32) -> (i32, i32) {
    %c0_i32 = arith.constant 0 : i32
    %c0_i32_0 = arith.constant 0 : i32
    return %arg0, %c0_i32 : i32, i32
  }
  func.func @transform_1(%arg0: i32, %arg1: i32) -> (i32, i32, i32) {
    %c0_i32 = arith.constant 0 : i32
    %c0_i32_0 = arith.constant 0 : i32
    %c0_i32_1 = arith.constant 0 : i32
    return %arg0, %c0_i32, %c0_i32_0 : i32, i32, i32
  }
  func.func @transform_2(%arg0: i32, %arg1: i32) -> (i32, i32, i32) {
    %c0_i32 = arith.constant 0 : i32
    %c0_i32_0 = arith.constant 0 : i32
    %c0_i32_1 = arith.constant 0 : i32
    return %arg0, %c0_i32, %c0_i32_0 : i32, i32, i32
  }
  func.func @transform_3(%arg0: i32, %arg1: i32) -> (i32, i32) {
    %c0_i32 = arith.constant 0 : i32
    %c0_i32_0 = arith.constant 0 : i32
    %c0_i32_1 = arith.constant 0 : i32
    return %c0_i32, %c0_i32_0 : i32, i32
  }
  func.func @transform_4(%arg0: i32, %arg1: i32) -> (i32, i32) {
    %c0_i32 = arith.constant 0 : i32
    %c0_i32_0 = arith.constant 0 : i32
    %c0_i32_1 = arith.constant 0 : i32
    return %c0_i32, %c0_i32_0 : i32, i32
  }
  func.func @transform_5(%arg0: i32, %arg1: i32) -> (i32, i32) {
    %c0_i32 = arith.constant 0 : i32
    %c0_i32_0 = arith.constant 0 : i32
    %c0_i32_1 = arith.constant 0 : i32
    return %c0_i32, %c0_i32_0 : i32, i32
  }
  func.func @transform_6(%arg0: i32, %arg1: i32) -> (i32, i32) {
    %c0_i32 = arith.constant 0 : i32
    %c0_i32_0 = arith.constant 0 : i32
    %c0_i32_1 = arith.constant 0 : i32
    return %c0_i32, %c0_i32_0 : i32, i32
  }
  func.func @transform_7(%arg0: i32, %arg1: i32) -> (i32, i32) {
    %c0_i32 = arith.constant 0 : i32
    %c0_i32_0 = arith.constant 0 : i32
    %c0_i32_1 = arith.constant 0 : i32
    return %c0_i32, %c0_i32_0 : i32, i32
  }
  func.func @transform_8(%arg0: i32, %arg1: i32) -> (i32, i32) {
    %c0_i32 = arith.constant 0 : i32
    %c0_i32_0 = arith.constant 0 : i32
    %c0_i32_1 = arith.constant 0 : i32
    return %c0_i32, %c0_i32_0 : i32, i32
  }
  func.func @transform_9(%arg0: i32, %arg1: i32) -> (i32, i32) {
    %c0_i32 = arith.constant 0 : i32
    %c0_i32_0 = arith.constant 0 : i32
    return %arg0, %c0_i32 : i32, i32
  }
  func.func @transform_10(%arg0: i32, %arg1: i32) -> (i32, i32) {
    %c0_i32 = arith.constant 0 : i32
    %c0_i32_0 = arith.constant 0 : i32
    return %arg0, %c0_i32 : i32, i32
  }
  func.func @transform_11(%arg0: i32, %arg1: i32) -> (i32, i32) {
    %c0_i32 = arith.constant 0 : i32
    %c0_i32_0 = arith.constant 0 : i32
    return %c0_i32, %arg1 : i32, i32
  }
  func.func @transform_12(%arg0: i32, %arg1: i32) -> (i32, i32) {
    %c0_i32 = arith.constant 0 : i32
    %c0_i32_0 = arith.constant 0 : i32
    return %c0_i32, %arg1 : i32, i32
  }
  func.func @transform_13(%arg0: i32, %arg1: i32) -> (i32, i32) {
    %c0_i32 = arith.constant 0 : i32
    %c0_i32_0 = arith.constant 0 : i32
    return %arg0, %c0_i32 : i32, i32
  }
}

</mosaic_0001>

<bundles_post_ra>
// kernel: tpu_custom_call.1
= control target key start
LH: loop header
LB: loop body
LE: loop exit
PB: predicated region body
PF: predicated region fallthrough
CT: control target
= control target key end

     0   :  { %s3939_s0 = inlined_call_operand.vmem [shape: s32[16,1], index: 0, kind: input, shape index: {}]   ;;  %s3940_s1 = inlined_call_operand.vmem [shape: f32[16,8,128], index: 1, kind: input, shape index: {}]   ;;  %s3941_s2 = inlined_call_operand.vmem [shape: f32[16,8,1], index: 2, kind: input, shape index: {}]   ;;  %s3942_s3 = inlined_call_operand.hbm [shape: f32[128,256], index: 3, kind: input, shape index: {}]   ;;  %s3943_s4 = inlined_call_operand.vmem [shape: f32[1,256], index: 4, kind: input, shape index: {}]   ;;  %s3944_s5 = inlined_call_operand.vmem [shape: f32[1,256], index: 5, kind: input, shape index: {}]   ;;  %s3945_s6 = inlined_call_operand.hbm [shape: f32[128,128], index: 6, kind: input, shape index: {}]   ;;  %s3946_s7 = inlined_call_operand.vmem [shape: f32[1,128], index: 7, kind: input, shape index: {}]   ;;  %s3947_s8 = inlined_call_operand.hbm [shape: f32[128,128], index: 8, kind: input, shape index: {}]   ;;  %s3948_s9 = inlined_call_operand.vmem [shape: f32[16,128], index: 9, kind: input, shape index: {}]   ;;  %s3949_s10 = inlined_call_operand.hbm [shape: f32[16,128], index: 10, kind: input, shape index: {}]   ;;  %s3950_s11 = inlined_call_operand.hbm [shape: bf16[128,2048], index: 11, kind: input, shape index: {}]   ;;  %s3951_s12 = inlined_call_operand.hbm [shape: f32[1,2048], index: 12, kind: input, shape index: {}]   ;;  %s3952_s13 = inlined_call_operand.vmem [shape: f32[16,1], index: 13, kind: output, shape index: {}]  }
   0x1   :  { %3963 = sst [smem:[#allocation28_spill]] %s3939_s0 }
   0x2   :  { %3964 = sst [smem:[#allocation29_spill]] %s3940_s1 }
   0x3   :  { %3965 = sst [smem:[#allocation30_spill]] %s3941_s2 }
   0x4   :  { %3966 = sst [smem:[#allocation31_spill]] %s3942_s3 }
   0x5   :  { %3967 = sst [smem:[#allocation32_spill]] %s3943_s4 }
   0x6   :  { %3968 = sst [smem:[#allocation33_spill]] %s3944_s5 }
   0x7   :  { %3969 = sst [smem:[#allocation34_spill]] %s3945_s6 }
   0x8   :  { %3970 = sst [smem:[#allocation35_spill]] %s3946_s7 }
   0x9   :  { %3971 = sst [smem:[#allocation36_spill]] %s3947_s8 }
   0xa   :  { %3972 = sst [smem:[#allocation37_spill]] %s3948_s9 }
   0xb   :  { %3973 = sst [smem:[#allocation38_spill]] %s3949_s10 }
   0xc   :  { %3974 = sst [smem:[#allocation39_spill]] %s3952_s13 }
   0xd   :  { %18 = vsyncpa [#allocation5], 0 }
   0xe   :  { %19 = vsyncpa [#allocation7], 0 }
   0xf   :  { %20 = vsyncpa [#allocation10], 0 }
  0x10   :  { %22 = vsyncpa [#allocation10 + $0x1], 0 }
  0x11   :  { %23 = vsyncpa [#allocation13], 0 }
  0x12   :  { %25 = vsyncpa [#allocation13 + $0x1], 0  ;;  %s3193_s25 = smov 0   ;;  %s3195_s26 = smov 0  }
  0x13   :  { %s3197_s27 = smov 0   ;;  %s3199_s28 = smov 0  }
  0x14   :  { %s3201_s29 = smov 0   ;;  %s3203_s30 = smov 0  }
  0x15   :  { %s3205_s14 = smov 0   ;;  %s3207_s15 = smov 0  }
  0x16   :  { %s3209_s16 = smov 0   ;;  %s3211_s17 = smov 0  }
  0x17   :  { %s3213_s18 = smov 0  }
  0x18 LB: > { %3975 = sst [smem:[#allocation19_spill]] %s3075_s27  ;;  %s3953_s22 = sadd.s32 4294967295, %s3107_s18   ;;  %s3107_s18 = sphi %s3213_s18, %s31_s18   ;;  %s3103_s17 = sphi %s3211_s17, %s4030_s17   ;;  %s3099_s16 = sphi %s3209_s16, %s4029_s16   ;;  %s3095_s15 = sphi %s3207_s15, %s4021_s15   ;;  %s3091_s14 = sphi %s3205_s14, %s4028_s14   ;;  %s3087_s30 = sphi %s3203_s30, %s4020_s30   ;;  %s3083_s29 = sphi %s3201_s29, %s4027_s29   ;;  %s3079_s28 = sphi %s3199_s28, %s4026_s28   ;;  %s3075_s27 = sphi %s3197_s27, %s4018_s27   ;;  %s3071_s26 = sphi %s3195_s26, %s4025_s26   ;;  %s3067_s25 = sphi %s3193_s25, %s4024_s25  }
  0x19   : > { %3976 = sst [smem:[#allocation20_spill]] %s3087_s30  ;;  %p2220_p0 = scmp.ge.s32.totalorder %s3107_s18, 1 }
  0x1a   : > { %3977 = sst [smem:[#allocation21_spill]] %s3091_s14  ;;  %p3255_p1 = scmp.eq.s32.totalorder %s3953_s22, 0 }
  0x1b   : > { %3978 = sst [smem:[#allocation22_spill]] %s3095_s15  ;;  %p382_p2 = scmp.lt.s32.totalorder %s3107_s18, 5 }
  0x1c   : > { %3979 = sst [smem:[#allocation23_spill]] %s3103_s17  ;;  %s3109_s19 = smov [#allocation6]  }
  0x1d   : > { %s3980_s6 = sld [smem:[#allocation34_spill]]  ;;  %p3260_p3 = pnand %p2220_p0, %p382_p2 }
  0x1e   : > { %s415_s20 = sshll.u32 %s3109_s19, 4  ;;  %s3955_s7 = smov 8   ;;  %s416_s20 = int_to_ptr.vmem [resolvable:$true] %s415_s20 }
  0x1f   : > { %p2590_p4 = pneg %p3260_p3  ;;  %s40_s19 = sadd.s32 1, %s3099_s16 }
  0x20   : > { %p41_p6 = scmp.ge.s32.totalorder %s40_s19, 2  ;;  %s43_s5 = sadd.s32 1, %s3103_s17 }
  0x21   : > { %p3268_p5 = pnand %p2590_p4, %p3255_p1  ;;  %s280_s4 = sadd.s32 1, %s3087_s30 }
  0x22   : > { %p287_p7 = scmp.ne.s32.totalorder %s3087_s30, %s3083_s29  ;;  %s4032_s19 = smov (%p41_p6, %s40_s19), 0 }
  0x23   : > { %s413_s21 = sshll.u32 %s3980_s6, 4  ;;  %s3954_s6 = smov 128   ;;  %s414_s21 = int_to_ptr.hbm [resolvable:$true] %s413_s21 }
  0x24   : > { %2596 = dma.hbm_to_vmem [thread:$0]  (!%p3268_p5), %s414_s21, 2048, %s416_s20, [#allocation7], %s3954_s6, %s3954_s6, %s3955_s7  }
  0x25   : > { %3984 = sst [smem:[#allocation24_spill]] %s4032_s19  ;;  %s4034_s5 = smov (!%p41_p6, %s43_s5), %s3103_s17 }
  0x26   : > { %p288_p8 = scmp.eq.s32.totalorder %s3107_s18, 0  ;;  %p293_p9 = scmp.ne.s32.totalorder %s3083_s29, %s3079_s28 }
  0x27   : > { %p45_p10 = scmp.ge.s32.totalorder %s4034_s5, 2  ;;  %s303_s21 = ssub.s32 %s3099_s16, %s4032_s19 }
  0x28   : > { %p3292_p11 = por %p288_p8, %p287_p7  ;;  %p3298_p12 = por %p3255_p1, %p293_p9 }
  0x29   : > { %s4036_s5 = smov (%p45_p10, %s4034_s5), 0  ;;  %p304_p13 = scmp.eq.s32.totalorder %s303_s21, 0 }
  0x2a   : > { %3987 = sst [smem:[#allocation25_spill]] %s4036_s5  ;;  %s306_s28 = sadd.s32 1, %s3075_s27 }
  0x2b   : > { %s277_s7 = ssub.s32 %s3103_s17, %s4036_s5  ;;  %p313_p0 = scmp.ne.s32.totalorder %s3075_s27, %s3071_s26 }
  0x2c   : > { %p278_p2 = scmp.eq.s32.totalorder %s277_s7, 0  ;;  %p319_p4 = scmp.ne.s32.totalorder %s3071_s26, %s3067_s25 }
  0x2d   : > { %s3312_s19 = scalar_select %p304_p13, %s3075_s27, %s306_s28  }
  0x2e   : > { %s3315_s14 = scalar_select %p278_p2, %s3087_s30, %s280_s4  }
  0x2f   : > { %3988 = sst [smem:[#allocation26_spill]] %s3312_s19  ;;  %p3319_p6 = por %p313_p0, %p288_p8 }
  0x30   : > { %3989 = sst [smem:[#allocation27_spill]] %s3315_s14  ;;  %p3325_p7 = por %p319_p4, %p3255_p1 }
  0x31   : > { %p2613_p9 = scmp.lt.s32.totalorder %s3107_s18, 4  ;;  %s478_s21 = sand.u32 1, %s3107_s18  }
  0x32   : > { %s480_s7 = sand.u32 1, %s3087_s30   ;;  %s2226_s5 = sshll.u32 %s3103_s17, 3 }
  0x33   : > { %s2225_s25 = sshll.u32 %s480_s7, 3  ;;  %s3992_s10 = sld [smem:[#allocation38_spill]] }
  0x34   : > { %s482_s2 = scalar_lea.vmem [#allocation9], %s2225_s25  ;;  %p2601_p8 = pnand %p2613_p9, %p3292_p11 }
  0x35   : > { %s490_s1 = sshll.u32 %s482_s2, 4  ;;  %p3340_p10 = pnand %p2613_p9, %p3319_p6  ;;  %s491_s1 = int_to_ptr.vmem [resolvable:$true] %s490_s1 }
  0x36   : > { %s3344_s7 = scalar_lea.sflag [#allocation10], %s478_s21  ;;  %s3994_s3 = sld [smem:[#allocation31_spill]] }
  0x37   : > { %s3112_s2 = smov [#allocation4]   ;;  %s3995_s8 = sld [smem:[#allocation36_spill]] }
  0x38   : > { %s395_s20 = sshll.u32 %s3112_s2, 4  ;;  %s3114_s17 = smov 16   ;;  %s396_s20 = int_to_ptr.vmem [resolvable:$true] %s395_s20 }
  0x39   : > { %s486_s4 = scalar_lea.hbm %s3992_s10, %s2226_s5  ;;  %s3113_s10 = smov 256  }
  0x3a   : > { %s488_s14 = sshll.u32 %s486_s4, 4  ;;  %s499_s21 = sand.u32 1, %s3075_s27   ;;  %s489_s14 = int_to_ptr.hbm [resolvable:$true] %s488_s14 }
  0x3b   : > { %2603 = dma.hbm_to_vmem [thread:$0]  (!%p2601_p8), %s489_s14, 128, %s491_s1, %s3344_s7  }
  0x3c   : > { %s393_s25 = sshll.u32 %s3994_s3, 4  ;;  %s3115_s1 = smov [#allocation8]   ;;  %s394_s25 = int_to_ptr.hbm [resolvable:$true] %s393_s25 }
  0x3d   : > { %s430_s4 = sshll.u32 %s3995_s8, 4  ;;  %s432_s14 = sshll.u32 %s3115_s1, 4  ;;  %s431_s4 = int_to_ptr.hbm [resolvable:$true] %s430_s4  ;;  %s433_s14 = int_to_ptr.vmem [resolvable:$true] %s432_s14 }
  0x3e   : > { %2593 = dma.hbm_to_vmem [thread:$0]  (!%p3268_p5), %s394_s25, 4096, %s396_s20, [#allocation5], %s3113_s10, %s3113_s10, %s3114_s17  }
  0x3f   : > { %s2227_s19 = sshll.u32 %s499_s21, 9  ;;  %s3996_s5 = smov 8  }
  0x40   : > { %s3997_s2 = smov 128   ;;  %s2507_s13 = sshll.u32 %s3099_s16, 5 }
  0x41   : > { %2599 = dma.hbm_to_vmem [thread:$0]  (!%p3268_p5), %s431_s4, 2048, %s433_s14, [#allocation7], %s3997_s2, %s3997_s2, %s3996_s5  }
  0x42   : > { %s506_s8 = scalar_lea.hbm %s3950_s11, %s2507_s13  ;;  %s501_s10 = scalar_lea.vmem [#allocation11], %s2227_s19 }
  0x43   : > { %s509_s17 = sshll.u32 %s501_s10, 4  ;;  %s507_s25 = sshll.u32 %s506_s8, 4  ;;  %s510_s17 = int_to_ptr.vmem [resolvable:$true] %s509_s17  ;;  %s508_s25 = int_to_ptr.hbm [resolvable:$true] %s507_s25 }
  0x44   : > { %s3116_s20 = smov 1024   ;;  %s3117_s1 = smov 512  }
  0x45   : > { %s3118_s30 = smov 32   ;;  %s2230_s22 = sshll.u32 %s499_s21, 3 }
  0x46   : > { %2606 = dma.hbm_to_vmem [thread:$0]  (!%p3340_p10), %s508_s25, 8192, %s510_s17, %s3344_s7, %s3116_s20, %s3117_s1, %s3118_s30  }
  0x47   : > { %s2231_s27 = sshll.u32 %s3099_s16, 3  ;;  %s523_s5 = scalar_lea.vmem [#allocation12], %s2230_s22 }
  0x48   : > { %s527_s14 = scalar_lea.hbm %s3951_s12, %s2231_s27  ;;  %s531_s3 = sshll.u32 %s523_s5, 4  ;;  %s532_s3 = int_to_ptr.vmem [resolvable:$true] %s531_s3 }
  0x49   : > { %s529_s2 = sshll.u32 %s527_s14, 4  ;;  %s520_s8 = scalar_lea.sflag [#allocation13], %s499_s21  ;;  %s530_s2 = int_to_ptr.hbm [resolvable:$true] %s529_s2 }
  0x4a   : > { %2609 = dma.hbm_to_vmem [thread:$0]  (!%p3340_p10), %s530_s2, 128, %s532_s3, %s520_s8  }
  0x4b   : > { %540 = sbr.rel (%p3260_p3) target bundleno = 1402 (0x57a), region = 72 }
  0x50   : > { %3046 = dma.done.wait (%p3255_p1), [#allocation5], 4096  }
  0x51   : > { %3048 = vsyncadd (%p3255_p1), [#allocation5], 4294963200 }
  0x52   : > { %3050 = dma.done.wait (%p3255_p1), [#allocation7], 4096  }
  0x53   : > { %3052 = vsyncadd (%p3255_p1), [#allocation7], 4294963200  ;;  %s3998_s27 = sadd.s32 4294967295, %s3107_s18   ;;  %s559_s30 = sand.u32 1, %s3083_s29  }
  0x54   : > { %s557_s0 = sand.u32 1, %s3998_s27   ;;  %s3387_s15 = sshll.u32 %s559_s30, 3 }
  0x55   : > { %s558_s24 = scalar_lea.sflag [#allocation10], %s557_s0  ;;  %s561_s7 = scalar_lea.vmem [#allocation9], %s3387_s15 }
  0x56   : > { %3054 = dma.done.wait (%p3298_p12), %s558_s24, 128  }
  0x57   : > { %3056 = vsyncadd (%p3298_p12), %s558_s24, 4294967168  ;;  %s569_s23 = sand.u32 1, %s3071_s26  }
  0x58   : > { %s2237_s21 = sshll.u32 %s569_s23, 9 }
  0x59   : > { %s3395_s19 = scalar_lea.vmem [#allocation11], %s2237_s21 }
  0x5a   : > { %3058 = dma.done.wait (%p3325_p7), %s558_s24, 8192  }
  0x5b   : > { %3060 = vsyncadd (%p3325_p7), %s558_s24, 4294959104  ;;  %s2238_s13 = sshll.u32 %s569_s23, 3  ;;  %s578_s28 = scalar_lea.sflag [#allocation13], %s569_s23 }
  0x5c   : > { %s3401_s10 = scalar_lea.vmem [#allocation12], %s2238_s13 }
  0x5d   : > { %3062 = dma.done.wait (%p3325_p7), %s578_s28, 128  }
  0x5e   : > { %3064 = vsyncadd (%p3325_p7), %s578_s28, 4294967168  ;;  %s3999_s6 = sld [smem:[#allocation22_spill]] }
  0x5f   : > { %s4000_s22 = sld [smem:[#allocation28_spill]] }
  0x60   : > { %s4001_s3 = sld [smem:[#allocation29_spill]] }
  0x61   : > { %s4002_s0 = sld [smem:[#allocation30_spill]] }
  0x62   : > { %s4003_s21 = sld [smem:[#allocation37_spill]] }
  0x63   : > { %s4004_s20 = sld [smem:[#allocation39_spill]] }
  0x64   : > { %p652_p1 = scmp.lt.s32.totalorder %s3999_s6, 1  ;;  %s2240_s17 = sshll.u32 %s3999_s6, 3 }
  0x65   : > { %p657_p3 = scmp.lt.s32.totalorder %s2240_s17, 15 }
  0x66   : > { %s4038_s6 = smov (!%p652_p1, %s3999_s6), 1 }
  0x67   : > { %s4040_s17 = smov (!%p657_p3, %s2240_s17), 15  ;;  %s3410_s25 = sshll.u32 %s4038_s6, 3 }
  0x68   : > { %s655_s4 = scalar_lea.vmem %s4000_s22, %s3410_s25  ;;  %s2241_s14 = sshll.u32 %s4040_s17, 3 }
  0x69   : > { %s3419_s2 = scalar_lea.vmem %s4001_s3, %s2241_s14  ;;  %s3424_s30 = scalar_lea.vmem %s4002_s0, %s2241_s14 }
  0x6a   : > { %s671_s13 = scalar_lea.vmem %s4003_s21, %s3410_s25  ;;  %s677_s1 = scalar_lea.vmem %s4004_s20, %s3410_s25 }
  0x6b   : > { %s4005_s22 = sld [smem:[#allocation21_spill]] }
  0x71   : > { %p2246_p5 = scmp.ne.s32.totalorder %s4005_s22, 0 }
  0x72   : > { %s4006_s9 = sld [smem:[#allocation32_spill]] (!%p2246_p5) }
  0x73   : > { %681 = sbr.rel (%p2246_p5) target bundleno = 1043 (0x413), region = 100  ;;  %s4007_s8 = sld [smem:[#allocation33_spill]] (!%p2246_p5) }
  0x74   : > { %s4012_s0 = sld [smem:[#allocation35_spill]] (!%p2246_p5) }
  0x78   : > { %v728_v0 = vld [vmem:[#allocation4 + $0xf0] sm:$0xff]  ;;  %v729_v1 = vld [vmem:[#allocation4 + $0xf8] sm:$0xff]  ;;  %v726_v2 = vld [vmem:[#allocation4 + $0xe0] sm:$0xff]  ;;  %vm896_vm1 = vcmask 7168  }
  0x79   : > { %736 = vmatpush.msra.mxu0 %v728_v0  ;;  %777 = vmatpush.msra.mxu1 %v729_v1  ;;  %v727_v3 = vld [vmem:[#allocation4 + $0xe8] sm:$0xff]  ;;  %v724_v4 = vld [vmem:[#allocation4 + $0xd0] sm:$0xff]  ;;  %v725_v5 = vld [vmem:[#allocation4 + $0xd8] sm:$0xff] }
  0x7a   : > { %v722_v6 = vld [vmem:[#allocation4 + $0xc0] sm:$0xff]  ;;  %v723_v7 = vld [vmem:[#allocation4 + $0xc8] sm:$0xff]  ;;  %v720_v8 = vld [vmem:[#allocation4 + $0xb0] sm:$0xff] }
  0x7b   : > { %737 = vmatpush.msra.mxu0 %v726_v2  ;;  %778 = vmatpush.msra.mxu1 %v727_v3  ;;  %v721_v9 = vld [vmem:[#allocation4 + $0xb8] sm:$0xff]  ;;  %v718_v10 = vld [vmem:[#allocation4 + $0xa0] sm:$0xff]  ;;  %v719_v11 = vld [vmem:[#allocation4 + $0xa8] sm:$0xff] }
  0x7c   : > { %v716_v12 = vld [vmem:[#allocation4 + $0x90] sm:$0xff]  ;;  %v717_v13 = vld [vmem:[#allocation4 + $0x98] sm:$0xff]  ;;  %v714_v14 = vld [vmem:[#allocation4 + $0x80] sm:$0xff] }
  0x7d   : > { %738 = vmatpush.msra.mxu0 %v724_v4  ;;  %779 = vmatpush.msra.mxu1 %v725_v5  ;;  %v715_v15 = vld [vmem:[#allocation4 + $0x88] sm:$0xff]  ;;  %v712_v16 = vld [vmem:[#allocation4 + $0x70] sm:$0xff]  ;;  %v713_v17 = vld [vmem:[#allocation4 + $0x78] sm:$0xff] }
  0x7e   : > { %v710_v18 = vld [vmem:[#allocation4 + $0x60] sm:$0xff]  ;;  %v711_v19 = vld [vmem:[#allocation4 + $0x68] sm:$0xff]  ;;  %v708_v20 = vld [vmem:[#allocation4 + $0x50] sm:$0xff] }
  0x7f   : > { %739 = vmatpush.msra.mxu0 %v722_v6  ;;  %780 = vmatpush.msra.mxu1 %v723_v7  ;;  %v709_v21 = vld [vmem:[#allocation4 + $0x58] sm:$0xff]  ;;  %v706_v22 = vld [vmem:[#allocation4 + $0x40] sm:$0xff]  ;;  %v707_v23 = vld [vmem:[#allocation4 + $0x48] sm:$0xff] }
  0x80   : > { %v704_v24 = vld [vmem:[#allocation4 + $0x30] sm:$0xff]  ;;  %v705_v25 = vld [vmem:[#allocation4 + $0x38] sm:$0xff]  ;;  %v702_v26 = vld [vmem:[#allocation4 + $0x20] sm:$0xff] }
  0x81   : > { %740 = vmatpush.msra.mxu0 %v720_v8  ;;  %781 = vmatpush.msra.mxu1 %v721_v9  ;;  %v703_v27 = vld [vmem:[#allocation4 + $0x28] sm:$0xff]  ;;  %v700_v28 = vld [vmem:[#allocation4 + $0x10] sm:$0xff]  ;;  %v701_v29 = vld [vmem:[#allocation4 + $0x18] sm:$0xff] }
  0x82   : > { %v698_v30 = vld [vmem:[#allocation4] sm:$0xff]  ;;  %v699_v31 = vld [vmem:[#allocation4 + $0x8] sm:$0xff]  ;;  %v3436_v32 = vld [vmem:[%s3419_s2] sm:$0xff] }
  0x83   : > { %741 = vmatpush.msra.mxu0 %v718_v10  ;;  %782 = vmatpush.msra.mxu1 %v719_v11  ;;  %v3441_v33 = vld [vmem:[%s3419_s2 + $0x8] sm:$0xff]  ;;  %v3446_v34 = vld [vmem:[%s3419_s2 + $0x10] sm:$0xff]  ;;  %v3451_v35 = vld [vmem:[%s3419_s2 + $0x18] sm:$0xff] }
  0x84   : > { %v3456_v36 = vld [vmem:[%s3419_s2 + $0x20] sm:$0xff]  ;;  %v3461_v37 = vld [vmem:[%s3419_s2 + $0x28] sm:$0xff]  ;;  %v3466_v38 = vld [vmem:[%s3419_s2 + $0x30] sm:$0xff] }
  0x85   : > { %742 = vmatpush.msra.mxu0 %v716_v12  ;;  %783 = vmatpush.msra.mxu1 %v717_v13  ;;  %v689_v39 = vld [vmem:[%s3419_s2 + $0x38] sm:$0xff]  ;;  %v730_v40 = vld [vmem:[%s4006_s9] sm:$0x3] }
  0x86   : > { %v3474_v41 = vperm.slane %v730_v40, 0  ;;  %v3476_v42 = vperm.slane %v730_v40, 1  ;;  %v834_v47 = vld [vmem:[%s4007_s8] sm:$0x3] }
  0x87   : > { %743 = vmatpush.msra.mxu0 %v714_v14  ;;  %784 = vmatpush.msra.mxu1 %v715_v15  ;;  %v3483_v48 = vperm.slane %v834_v47, 0  ;;  %v3485_v49 = vperm.slane %v834_v47, 1 }
  0x89   : > { %744 = vmatpush.msra.mxu0 %v712_v16  ;;  %785 = vmatpush.msra.mxu1 %v713_v17 }
  0x8b   : > { %745 = vmatpush.msra.mxu0 %v710_v18  ;;  %786 = vmatpush.msra.mxu1 %v711_v19 }
  0x8d   : > { %746 = vmatpush.msra.mxu0 %v708_v20  ;;  %787 = vmatpush.msra.mxu1 %v709_v21 }
  0x8f   : > { %747 = vmatpush.msra.mxu0 %v706_v22  ;;  %788 = vmatpush.msra.mxu1 %v707_v23 }
  0x91   : > { %748 = vmatpush.msra.mxu0 %v704_v24  ;;  %789 = vmatpush.msra.mxu1 %v705_v25 }
  0x93   : > { %749 = vmatpush.msra.mxu0 %v702_v26  ;;  %790 = vmatpush.msra.mxu1 %v703_v27 }
  0x95   : > { %750 = vmatpush.msra.mxu0 %v700_v28  ;;  %791 = vmatpush.msra.mxu1 %v701_v29 }
  0x97   : > { %751 = vmatpush.msra.mxu0 %v698_v30  ;;  %792 = vmatpush.msra.mxu1 %v699_v31 }
  0x98   : > { %752 = vmatmul.f32.vlgmr.msra.gmra.mxu0 %v3436_v32  ;;  %793 = vmatmul.f32.vlgmr.msra.gmra.mxu1 %v3436_v32 }
  0xa0   : > { %755 = vmatmul.f32.gmra.mxu0 %v3441_v33  ;;  %796 = vmatmul.f32.gmra.mxu1 %v3441_v33 }
  0xa8   : > { %758 = vmatmul.f32.gmra.mxu0 %v3446_v34  ;;  %799 = vmatmul.f32.gmra.mxu1 %v3446_v34 }
  0xb0   : > { %761 = vmatmul.f32.gmra.mxu0 %v3451_v35  ;;  %802 = vmatmul.f32.gmra.mxu1 %v3451_v35 }
  0xb8   : > { %764 = vmatmul.f32.gmra.mxu0 %v3456_v36  ;;  %805 = vmatmul.f32.gmra.mxu1 %v3456_v36 }
  0xc0   : > { %767 = vmatmul.f32.gmra.mxu0 %v3461_v37  ;;  %808 = vmatmul.f32.gmra.mxu1 %v3461_v37 }
  0xc8   : > { %770 = vmatmul.f32.gmra.mxu0 %v3466_v38  ;;  %811 = vmatmul.f32.gmra.mxu1 %v3466_v38 }
  0xd0   : > { %773 = vmatmul.f32.gmra.mxu0 %v689_v39  ;;  %814 = vmatmul.f32.gmra.mxu1 %v689_v39 }
 0x115   : > { %v753_v43 = vpop.f32.mrf.mxu0  ;;  %v794_v44 = vpop.f32.mrf.mxu1 }
 0x116   : > { %v754_v45 = vadd.f32 %v753_v43, %v3474_v41  ;;  %v795_v46 = vadd.f32 %v794_v44, %v3476_v42 }
 0x118   : > { %2723 = vtanh.f32 %v754_v45 }
 0x119   : > { %2725 = vtanh.f32 %v795_v46 }
 0x11d   : > { %v756_v50 = vpop.f32.mrf.mxu0  ;;  %v797_v51 = vpop.f32.mrf.mxu1 }
 0x11e   : > { %v2724_v52 = vpop.eup %2723  ;;  %v757_v53 = vadd.f32 %v756_v50, %v3474_v41  ;;  %v798_v54 = vadd.f32 %v797_v51, %v3476_v42 }
 0x11f   : > { %v2726_v55 = vpop.eup %2725  ;;  %v840_v56 = vmul.f32 %v2724_v52, %v3483_v48 }
 0x120   : > { %2727 = vtanh.f32 %v757_v53  ;;  %v841_v57 = vmul.f32 %v2726_v55, %v3485_v49 }
 0x121   : > { %2729 = vtanh.f32 %v798_v54 }
 0x122   : > { %v856_v58 = vadd.f32 %v841_v57, %v840_v56 }
 0x124   : > { %857 = vadd.xlane.f32.xlu0 %v856_v58 }
 0x125   : > { %v759_v59 = vpop.f32.mrf.mxu0  ;;  %v800_v60 = vpop.f32.mrf.mxu1 }
 0x126   : > { %v2728_v61 = vpop.eup %2727  ;;  %v760_v62 = vadd.f32 %v759_v59, %v3474_v41  ;;  %v801_v63 = vadd.f32 %v800_v60, %v3476_v42 }
 0x127   : > { %v2730_v0 = vpop.eup %2729  ;;  %v842_v1 = vmul.f32 %v2728_v61, %v3483_v48 }
 0x128   : > { %2731 = vtanh.f32 %v760_v62  ;;  %v843_v2 = vmul.f32 %v2730_v0, %v3485_v49 }
 0x129   : > { %2733 = vtanh.f32 %v801_v63 }
 0x12a   : > { %v859_v3 = vadd.f32 %v843_v2, %v842_v1 }
 0x12c   : > { %860 = vadd.xlane.f32.xlu0 %v859_v3 }
 0x12d   : > { %v762_v4 = vpop.f32.mrf.mxu0  ;;  %v803_v5 = vpop.f32.mrf.mxu1 }
 0x12e   : > { %v2732_v6 = vpop.eup %2731  ;;  %v763_v7 = vadd.f32 %v762_v4, %v3474_v41  ;;  %v804_v8 = vadd.f32 %v803_v5, %v3476_v42  ;;  %v691_v4 = vld [vmem:[%s3424_s30 + $0x8] sm:$0xff] }
 0x12f   : > { %v2734_v9 = vpop.eup %2733  ;;  %v844_v10 = vmul.f32 %v2732_v6, %v3483_v48  ;;  %vm881_vm2 = vcmp.gt.f32.partialorder %v691_v4, 0.0 }
 0x130   : > { %2735 = vtanh.f32 %v763_v7  ;;  %v845_v11 = vmul.f32 %v2734_v9, %v3485_v49 }
 0x131   : > { %2737 = vtanh.f32 %v804_v8 }
 0x132   : > { %v862_v12 = vadd.f32 %v845_v11, %v844_v10  ;;  %v3522_v11 = vld [vmem:[%s3424_s30 + $0x10] sm:$0xff] }
 0x133   : > { %vm882_vm3 = vcmp.gt.f32.partialorder %v3522_v11, 0.0 }
 0x134   : > { %863 = vadd.xlane.f32.xlu1 %v862_v12 }
 0x135   : > { %v765_v13 = vpop.f32.mrf.mxu0  ;;  %v806_v14 = vpop.f32.mrf.mxu1 }
 0x136   : > { %v2736_v15 = vpop.eup %2735  ;;  %v766_v16 = vadd.f32 %v765_v13, %v3474_v41  ;;  %v807_v17 = vadd.f32 %v806_v14, %v3476_v42 }
 0x137   : > { %v2738_v18 = vpop.eup %2737  ;;  %v846_v19 = vmul.f32 %v2736_v15, %v3483_v48 }
 0x138   : > { %2739 = vtanh.f32 %v766_v16  ;;  %v847_v20 = vmul.f32 %v2738_v18, %v3485_v49 }
 0x139   : > { %2741 = vtanh.f32 %v807_v17 }
 0x13a   : > { %v865_v21 = vadd.f32 %v847_v20, %v846_v19 }
 0x13c   : > { %866 = vadd.xlane.f32.xlu1 %v865_v21 }
 0x13d   : > { %v768_v22 = vpop.f32.mrf.mxu0  ;;  %v809_v23 = vpop.f32.mrf.mxu1 }
 0x13e   : > { %v2740_v24 = vpop.eup %2739  ;;  %v769_v25 = vadd.f32 %v768_v22, %v3474_v41  ;;  %v810_v26 = vadd.f32 %v809_v23, %v3476_v42  ;;  %v3527_v23 = vld [vmem:[%s3424_s30 + $0x18] sm:$0xff] }
 0x13f   : > { %v2742_v27 = vpop.eup %2741  ;;  %v848_v28 = vmul.f32 %v2740_v24, %v3483_v48  ;;  %vm883_vm4 = vcmp.gt.f32.partialorder %v3527_v23, 0.0 }
 0x140   : > { %2743 = vtanh.f32 %v769_v25  ;;  %v849_v29 = vmul.f32 %v2742_v27, %v3485_v49 }
 0x141   : > { %2745 = vtanh.f32 %v810_v26 }
 0x142   : > { %v868_v30 = vadd.f32 %v849_v29, %v848_v28 }
 0x144   : > { %869 = vadd.xlane.f32.xlu2 %v868_v30 }
 0x145   : > { %v771_v31 = vpop.f32.mrf.mxu0  ;;  %v812_v39 = vpop.f32.mrf.mxu1 }
 0x146   : > { %v2744_v40 = vpop.eup %2743  ;;  %v772_v43 = vadd.f32 %v771_v31, %v3474_v41  ;;  %v813_v44 = vadd.f32 %v812_v39, %v3476_v42 }
 0x147   : > { %v2746_v45 = vpop.eup %2745  ;;  %v850_v46 = vmul.f32 %v2744_v40, %v3483_v48 }
 0x148   : > { %2747 = vtanh.f32 %v772_v43  ;;  %v851_v47 = vmul.f32 %v2746_v45, %v3485_v49 }
 0x149   : > { %2749 = vtanh.f32 %v813_v44 }
 0x14a   : > { %v871_v50 = vadd.f32 %v851_v47, %v850_v46  ;;  %v3534_v46 = vld [vmem:[%s3424_s30 + $0x20] sm:$0xff] }
 0x14b   : > { %vm884_vm5 = vcmp.gt.f32.partialorder %v3534_v46, 0.0 }
 0x14c   : > { %872 = vadd.xlane.f32.xlu2 %v871_v50 }
 0x14d   : > { %v774_v51 = vpop.f32.mrf.mxu0  ;;  %v815_v52 = vpop.f32.mrf.mxu1 }
 0x14e   : > { %v2748_v53 = vpop.eup %2747  ;;  %v775_v54 = vadd.f32 %v774_v51, %v3474_v41  ;;  %v816_v55 = vadd.f32 %v815_v52, %v3476_v42  ;;  %v690_v41 = vld [vmem:[%s3424_s30] sm:$0xff] }
 0x14f   : > { %v2750_v56 = vpop.eup %2749  ;;  %v852_v57 = vmul.f32 %v2748_v53, %v3483_v48  ;;  %vm880_vm0 = vcmp.gt.f32.partialorder %v690_v41, 0.0 }
 0x150   : > { %2751 = vtanh.f32 %v775_v54  ;;  %v853_v58 = vmul.f32 %v2750_v56, %v3485_v49  ;;  %v3119_v56 = vmov 0  }
 0x151   : > { %2753 = vtanh.f32 %v816_v55  ;;  %2719 = vset.pattern.permute.xlu2 %v3119_v56  ;;  %2720 = vset.pattern.permute.xlu0 %v3119_v56 }
 0x152   : > { %v874_v59 = vadd.f32 %v853_v58, %v852_v57  ;;  %2721 = vset.pattern.permute.xlu1 %v3119_v56 }
 0x154   : > { %875 = vadd.xlane.f32.xlu0 %v874_v59 }
 0x156   : > { %v2752_v60 = vpop.eup %2751 }
 0x157   : > { %v2754_v61 = vpop.eup %2753  ;;  %v854_v62 = vmul.f32 %v2752_v60, %v3483_v48 }
 0x158   : > { %v855_v63 = vmul.f32 %v2754_v61, %v3485_v49 }
 0x15a   : > { %v877_v0 = vadd.f32 %v855_v63, %v854_v62 }
 0x15c   : > { %878 = vadd.xlane.f32.xlu1 %v877_v0 }
 0x197   : > { %v858_v42 = vpop.xlane.xlu0 %857 }
 0x198   : > { %v888_v1 = vsel %vm880_vm0, %v858_v42, -1e+30 }
 0x199   : > { %v897_v2 = vsel %vm896_vm1, %v888_v1, -inf }
 0x19a   : > { %v898_v3 = vrot.slane %v897_v2, 4 }
 0x19c   : > { %v899_v5 = vmax.f32 %v897_v2, %v898_v3  ;;  %v3543_v2 = vld [vmem:[%s3424_s30 + $0x28] sm:$0xff] }
 0x19d   : > { %vm885_vm6 = vcmp.gt.f32.partialorder %v3543_v2, 0.0 }
 0x19e   : > { %v900_v6 = vrot.slane %v899_v5, 2 }
 0x19f   : > { %v861_v7 = vpop.xlane.xlu0 %860 }
 0x1a0   : > { %v901_v8 = vmax.f32 %v899_v5, %v900_v6  ;;  %v889_v48 = vsel %vm881_vm2, %v861_v7, -1e+30 }
 0x1a1   : > { %v904_v49 = vsel %vm896_vm1, %v889_v48, -inf }
 0x1a2   : > { %v902_v9 = vrot.slane %v901_v8, 1  ;;  %v905_v10 = vrot.slane %v904_v49, 4 }
 0x1a4   : > { %v903_v12 = vmax.f32 %v901_v8, %v902_v9  ;;  %v906_v13 = vmax.f32 %v904_v49, %v905_v10 }
 0x1a6   : > { %v953_v14 = vsub.f32 %v888_v1, %v903_v12  ;;  %v907_v15 = vrot.slane %v906_v13, 2 }
 0x1a7   : > { %v864_v16 = vpop.xlane.xlu1 %863 }
 0x1a8   : > { %v961_v17 = vmul.f32 1.442695, %v953_v14  ;;  %v908_v18 = vmax.f32 %v906_v13, %v907_v15  ;;  %v890_v19 = vsel %vm882_vm3, %v864_v16, -1e+30 }
 0x1a9   : > { %v911_v20 = vsel %vm896_vm1, %v890_v19, -inf }
 0x1aa   : > { %2755 = vpow2.f32 %v961_v17  ;;  %v909_v21 = vrot.slane %v908_v18, 1  ;;  %v912_v22 = vrot.slane %v911_v20, 4 }
 0x1ac   : > { %v910_v24 = vmax.f32 %v908_v18, %v909_v21  ;;  %v913_v25 = vmax.f32 %v911_v20, %v912_v22 }
 0x1ae   : > { %v954_v26 = vsub.f32 %v889_v48, %v910_v24  ;;  %v914_v27 = vrot.slane %v913_v25, 2 }
 0x1af   : > { %v867_v28 = vpop.xlane.xlu1 %866 }
 0x1b0   : > { %v2756_v29 = vpop.eup %2755  ;;  %v963_v30 = vmul.f32 1.442695, %v954_v26  ;;  %v915_v31 = vmax.f32 %v913_v25, %v914_v27  ;;  %v891_v39 = vsel %vm883_vm4, %v867_v28, -1e+30  ;;  %v3558_v25 = vld [vmem:[%s3424_s30 + $0x30] sm:$0xff] }
 0x1b1   : > { %v3530_v40 = vmul.f32 %v2756_v29, %v690_v41  ;;  %v918_v43 = vsel %vm896_vm1, %v891_v39, -inf  ;;  %vm886_vm7 = vcmp.gt.f32.partialorder %v3558_v25, 0.0 }
 0x1b2   : > { %2757 = vpow2.f32 %v963_v30  ;;  %v916_v44 = vrot.slane %v915_v31, 1  ;;  %v919_v45 = vrot.slane %v918_v43, 4 }
 0x1b3   : > { %v985_v47 = vsel %vm896_vm1, %v3530_v40, 0.0 }
 0x1b4   : > { %v986_v50 = vrot.slane %v985_v47, 4  ;;  %v917_v51 = vmax.f32 %v915_v31, %v916_v44  ;;  %v920_v52 = vmax.f32 %v918_v43, %v919_v45 }
 0x1b6   : > { %v987_v53 = vadd.f32 %v986_v50, %v985_v47  ;;  %v955_v54 = vsub.f32 %v890_v19, %v917_v51  ;;  %v921_v55 = vrot.slane %v920_v52, 2 }
 0x1b7   : > { %v870_v57 = vpop.xlane.xlu2 %869 }
 0x1b8   : > { %v2758_v58 = vpop.eup %2757  ;;  %v988_v59 = vrot.slane %v987_v53, 2  ;;  %v965_v60 = vmul.f32 1.442695, %v955_v54  ;;  %v922_v61 = vmax.f32 %v920_v52, %v921_v55  ;;  %v892_v62 = vsel %vm884_vm5, %v870_v57, -1e+30 }
 0x1b9   : > { %v3539_v63 = vmul.f32 %v2758_v58, %v691_v4  ;;  %v925_v0 = vsel %vm896_vm1, %v892_v62, -inf }
 0x1ba   : > { %v989_v41 = vadd.f32 %v988_v59, %v987_v53  ;;  %2759 = vpow2.f32 %v965_v60  ;;  %v923_v42 = vrot.slane %v922_v61, 1  ;;  %v926_v1 = vrot.slane %v925_v0, 4 }
 0x1bb   : > { %v992_v3 = vsel %vm896_vm1, %v3539_v63, 0.0 }
 0x1bc   : > { %v990_v5 = vrot.slane %v989_v41, 1  ;;  %v993_v6 = vrot.slane %v992_v3, 4  ;;  %v924_v7 = vmax.f32 %v922_v61, %v923_v42  ;;  %v927_v8 = vmax.f32 %v925_v0, %v926_v1 }
 0x1be   : > { %v991_v48 = vadd.f32 %v990_v5, %v989_v41  ;;  %v994_v4 = vadd.f32 %v993_v6, %v992_v3  ;;  %v956_v49 = vsub.f32 %v891_v39, %v924_v7  ;;  %v928_v9 = vrot.slane %v927_v8, 2 }
 0x1bf   : > { %v873_v10 = vpop.xlane.xlu2 %872 }
 0x1c0   : > { %v2760_v12 = vpop.eup %2759  ;;  %v3548_v13 = vmax.f32 %v991_v48, 1e-30  ;;  %v995_v14 = vrot.slane %v994_v4, 2  ;;  %v967_v15 = vmul.f32 1.442695, %v956_v49  ;;  %v929_v16 = vmax.f32 %v927_v8, %v928_v9 }
 0x1c1   : > { %v3551_v17 = vmul.f32 %v2760_v12, %v3522_v11  ;;  %v893_v18 = vsel %vm885_vm6, %v873_v10, -1e+30  ;;  %v3561_v11 = vld [vmem:[%s3424_s30 + $0x38] sm:$0xff]  ;;  %s3120_s30 = smov 64  }
 0x1c2   : > { %2761 = vrcp.f32 %v3548_v13  ;;  %v996_v19 = vadd.f32 %v995_v14, %v994_v4  ;;  %v930_v20 = vrot.slane %v929_v16, 1  ;;  %v932_v21 = vsel %vm896_vm1, %v893_v18, -inf }
 0x1c3   : > { %v999_v22 = vsel %vm896_vm1, %v3551_v17, 0.0  ;;  %2763 = vpow2.f32 %v967_v15  ;;  %v933_v24 = vrot.slane %v932_v21, 4  ;;  %vm887_vm8 = vcmp.gt.f32.partialorder %v3561_v11, 0.0 }
 0x1c4   : > { %v997_v26 = vrot.slane %v996_v19, 1  ;;  %v1000_v27 = vrot.slane %v999_v22, 4  ;;  %v931_v28 = vmax.f32 %v929_v16, %v930_v20  ;;  %v1058_v56 = vand.u32 2147483647, %v3548_v13 }
 0x1c5   : > { %v934_v29 = vmax.f32 %v932_v21, %v933_v24  ;;  %vm1054_vm9 = vweird.f32 %v3548_v13  ;;  %v1060_v42 = vand.u32 2147483648, %v3548_v13 }
 0x1c6   : > { %v998_v30 = vadd.f32 %v997_v26, %v996_v19  ;;  %v1001_v31 = vadd.f32 %v1000_v27, %v999_v22  ;;  %v957_v39 = vsub.f32 %v892_v62, %v931_v28  ;;  %vm3581_vm11 = vcmp.eq.f32.partialorder %v1058_v56, 8.507059e+37 }
 0x1c7   : > { %v935_v43 = vrot.slane %v934_v29, 2  ;;  %v876_v44 = vpop.xlane.xlu0 %875  ;;  %v1061_v16 = vor.u32 1.1754944e-38, %v1060_v42 }
 0x1c8   : > { %v2762_v45 = vpop.eup %2761  ;;  %v3564_v47 = vmax.f32 %v998_v30, 1e-30  ;;  %v1002_v50 = vrot.slane %v1001_v31, 2  ;;  %v969_v51 = vmul.f32 1.442695, %v957_v39 }
 0x1c9   : > { %v2764_v52 = vpop.eup %2763  ;;  %v936_v53 = vmax.f32 %v934_v29, %v935_v43  ;;  %v3567_v54 = vsel %vm886_vm7, %v876_v44, -1e+30  ;;  %v1050_v55 = vmul.f32 %v2762_v45, %v3548_v13  ;;  %vm1055_vm10 = vweird.f32 %v2762_v45 }
 0x1ca   : > { %2765 = vrcp.f32 %v3564_v47  ;;  %v1003_v57 = vadd.f32 %v1002_v50, %v1001_v31  ;;  %v3573_v58 = vmul.f32 %v2764_v52, %v3527_v23  ;;  %v939_v59 = vsel %vm896_vm1, %v3567_v54, -inf  ;;  %vm1056_vm12 = vmor %vm1054_vm9, %vm1055_vm10 }
 0x1cb   : > { %2767 = vpow2.f32 %v969_v51  ;;  %v937_v60 = vrot.slane %v936_v53, 1  ;;  %v940_v61 = vrot.slane %v939_v59, 4  ;;  %v1051_v62 = vsub.f32 1.0, %v1050_v55 }
 0x1cc   : > { %v1004_v0 = vrot.slane %v1003_v57, 1  ;;  %v1006_v41 = vsel %vm896_vm1, %v3573_v58, 0.0  ;;  %v1073_v8 = vand.u32 2147483647, %v3564_v47  ;;  %v1075_v19 = vand.u32 2147483648, %v3564_v47 }
 0x1cd   : > { %v1007_v1 = vrot.slane %v1006_v41, 4  ;;  %v938_v3 = vmax.f32 %v936_v53, %v937_v60  ;;  %v941_v5 = vmax.f32 %v939_v59, %v940_v61  ;;  %v1052_v23 = vmul.f32 %v2762_v45, %v1051_v62 }
 0x1ce   : > { %v1005_v6 = vadd.f32 %v1004_v0, %v1003_v57  ;;  %vm1069_vm13 = vweird.f32 %v3564_v47  ;;  %vm3609_vm14 = vcmp.eq.f32.partialorder %v1073_v8, 8.507059e+37  ;;  %v1076_v59 = vor.u32 1.1754944e-38, %v1075_v19 }
 0x1cf   : > { %v1008_v48 = vadd.f32 %v1007_v1, %v1006_v41  ;;  %v958_v4 = vsub.f32 %v893_v18, %v938_v3  ;;  %v942_v49 = vrot.slane %v941_v5, 2  ;;  %v879_v9 = vpop.xlane.xlu1 %878  ;;  %v1053_v10 = vadd.f32 %v2762_v45, %v1052_v23 }
 0x1d0   : > { %v2766_v12 = vpop.eup %2765  ;;  %v3586_v14 = vmax.f32 %v1005_v6, 1e-30  ;;  %v3590_v15 = vsel %vm887_vm8, %v879_v9, -1e+30 }
 0x1d1   : > { %v2768_v20 = vpop.eup %2767  ;;  %v1009_v21 = vrot.slane %v1008_v48, 2  ;;  %v971_v22 = vmul.f32 1.442695, %v958_v4  ;;  %v943_v24 = vmax.f32 %v941_v5, %v942_v49  ;;  %v946_v18 = vsel %vm896_vm1, %v3590_v15, -inf }
 0x1d2   : > { %2769 = vrcp.f32 %v3586_v14  ;;  %v3600_v26 = vmul.f32 %v2768_v20, %v3534_v46  ;;  %v947_v27 = vrot.slane %v946_v18, 4  ;;  %v1057_v28 = vsel %vm1056_vm12, %v2762_v45, %v1053_v10 }
 0x1d3   : > { %v1010_v29 = vadd.f32 %v1009_v21, %v1008_v48  ;;  %2771 = vpow2.f32 %v971_v22  ;;  %v944_v30 = vrot.slane %v943_v24, 1  ;;  %v1062_v31 = vsel %vm3581_vm11, %v1061_v16, %v1057_v28 }
 0x1d4   : > { %v1013_v39 = vsel %vm896_vm1, %v3600_v26, 0.0  ;;  %v948_v43 = vmax.f32 %v946_v18, %v947_v27  ;;  %v1063_v13 = vmul.f32 %v1062_v31, %v3530_v40  ;;  %v1065_v44 = vmul.f32 %v2766_v12, %v3564_v47 }
 0x1d5   : > { %v1011_v50 = vrot.slane %v1010_v29, 1  ;;  %v1014_v51 = vrot.slane %v1013_v39, 4  ;;  %v945_v46 = vmax.f32 %v943_v24, %v944_v30  ;;  %vm1070_vm15 = vweird.f32 %v2766_v12 }
 0x1d6   : > { %v949_v52 = vrot.slane %v948_v43, 2  ;;  %1171 = vperm.xlu2 %2719, %v1063_v13   ;;  %v1066_v45 = vsub.f32 1.0, %v1065_v44  ;;  %v1088_v62 = vand.u32 2147483647, %v3586_v14  ;;  %vm1071_vm0 = vmor %vm1069_vm13, %vm1070_vm15  ;;  %vm1084_vm3 = vweird.f32 %v3586_v14 }
 0x1d7   : > { %v1012_v55 = vadd.f32 %v1011_v50, %v1010_v29  ;;  %v1015_v56 = vadd.f32 %v1014_v51, %v1013_v39  ;;  %v959_v57 = vsub.f32 %v3567_v54, %v945_v46  ;;  %v1090_v54 = vand.u32 2147483648, %v3586_v14 }
 0x1d8   : > { %v2770_v40 = vpop.eup %2769  ;;  %v950_v60 = vmax.f32 %v948_v43, %v949_v52  ;;  %v1067_v61 = vmul.f32 %v2766_v12, %v1066_v45  ;;  %vm1089_vm5 = vcmp.eq.f32.partialorder %v1088_v62, 8.507059e+37 }
 0x1d9   : > { %v2772_v0 = vpop.eup %2771  ;;  %v3615_v41 = vmax.f32 %v1012_v55, 1e-30  ;;  %v1016_v42 = vrot.slane %v1015_v56, 2  ;;  %v973_v1 = vmul.f32 1.442695, %v959_v57  ;;  %v1080_v3 = vmul.f32 %v2770_v40, %v3586_v14 }
 0x1da   : > { %v3619_v5 = vmul.f32 %v2772_v0, %v3543_v2  ;;  %v951_v23 = vrot.slane %v950_v60, 1  ;;  %v1068_v6 = vadd.f32 %v2766_v12, %v1067_v61  ;;  %vm1085_vm2 = vweird.f32 %v2770_v40 }
 0x1db   : > { %2773 = vrcp.f32 %v3615_v41  ;;  %v1017_v7 = vadd.f32 %v1016_v42, %v1015_v56  ;;  %v1081_v8 = vsub.f32 1.0, %v1080_v3  ;;  %vm1086_vm4 = vmor %vm1084_vm3, %vm1085_vm2  ;;  %v1105_v50 = vand.u32 2147483648, %v3615_v41 }
 0x1dc   : > { %v1020_v48 = vsel %vm896_vm1, %v3619_v5, 0.0  ;;  %2775 = vpow2.f32 %v973_v1  ;;  %v952_v4 = vmax.f32 %v950_v60, %v951_v23  ;;  %v1072_v49 = vsel %vm1071_vm0, %v2766_v12, %v1068_v6 }
 0x1dd   : > { %v1018_v2 = vrot.slane %v1017_v7, 1  ;;  %v1021_v9 = vrot.slane %v1020_v48, 4  ;;  %v1077_v10 = vsel %vm3609_vm14, %v1076_v59, %v1072_v49  ;;  %v1082_v16 = vmul.f32 %v2770_v40, %v1081_v8 }
 0x1de   : > { %v960_v19 = vsub.f32 %v3590_v15, %v952_v4  ;;  %v1078_v20 = vmul.f32 %v1077_v10, %v3539_v63  ;;  %v1091_v12 = vor.u32 1.1754944e-38, %v1090_v54  ;;  %v1103_v52 = vand.u32 2147483647, %v3615_v41 }
 0x1df   : > { %v1019_v47 = vadd.f32 %v1018_v2, %v1017_v7  ;;  %v1022_v21 = vadd.f32 %v1021_v9, %v1020_v48  ;;  %v1083_v22 = vadd.f32 %v2770_v40, %v1082_v16  ;;  %vm1099_vm7 = vweird.f32 %v3615_v41 }
 0x1e0   : > { %v975_v24 = vmul.f32 1.442695, %v960_v19  ;;  %1176 = vperm.xlu0 %2720, %v1078_v20   ;;  %v1106_v59 = vor.u32 1.1754944e-38, %v1105_v50  ;;  %vm1104_vm9 = vcmp.eq.f32.partialorder %v1103_v52, 8.507059e+37 }
 0x1e1   : > { %v2774_v18 = vpop.eup %2773  ;;  %v1045_v27 = vmax.f32 %v1019_v47, 1e-30  ;;  %v1023_v28 = vrot.slane %v1022_v21, 2  ;;  %v1087_v29 = vsel %vm1086_vm4, %v2770_v40, %v1083_v22 }
 0x1e2   : > { %v2776_v30 = vpop.eup %2775  ;;  %2777 = vpow2.f32 %v975_v24  ;;  %v1092_v15 = vsel %vm1089_vm5, %v1091_v12, %v1087_v29  ;;  %v1095_v63 = vmul.f32 %v2774_v18, %v3615_v41  ;;  %vm1100_vm6 = vweird.f32 %v2774_v18 }
 0x1e3   : > { %2779 = vrcp.f32 %v1045_v27  ;;  %v1024_v31 = vadd.f32 %v1023_v28, %v1022_v21  ;;  %v3635_v39 = vmul.f32 %v2776_v30, %v3558_v25  ;;  %v1093_v14 = vmul.f32 %v1092_v15, %v3551_v17  ;;  %vm1101_vm8 = vmor %vm1099_vm7, %vm1100_vm6 }
 0x1e4   : > { %v1096_v43 = vsub.f32 1.0, %v1095_v63  ;;  %v1118_v23 = vand.u32 2147483647, %v1045_v27  ;;  %v1120_v6 = vand.u32 2147483648, %v1045_v27  ;;  %vm1114_vm11 = vweird.f32 %v1045_v27 }
 0x1e5   : > { %v1025_v13 = vrot.slane %v1024_v31, 1  ;;  %v1027_v44 = vsel %vm896_vm1, %v3635_v39, 0.0  ;;  %1181 = vperm.xlu1 %2721, %v1093_v14  }
 0x1e6   : > { %v1028_v51 = vrot.slane %v1027_v44, 4  ;;  %v1097_v46 = vmul.f32 %v2774_v18, %v1096_v43  ;;  %v1121_v2 = vor.u32 1.1754944e-38, %v1120_v6  ;;  %v1275_v6 = vld [vmem:[#allocation6 + $0x50] sm:$0xff] }
 0x1e7   : > { %v1026_v45 = vadd.f32 %v1025_v13, %v1024_v31 }
 0x1e8   : > { %v2778_v53 = vpop.eup %2777  ;;  %v1029_v55 = vadd.f32 %v1028_v51, %v1027_v44  ;;  %v1098_v25 = vadd.f32 %v2774_v18, %v1097_v46 }
 0x1e9   : > { %v2780_v17 = vpop.eup %2779  ;;  %v1046_v56 = vmax.f32 %v1026_v45, 1e-30  ;;  %v3644_v57 = vmul.f32 %v2778_v53, %v3561_v11 }
 0x1ea   : > { %v1030_v40 = vrot.slane %v1029_v55, 2  ;;  %v1102_v60 = vsel %vm1101_vm8, %v2774_v18, %v1098_v25  ;;  %v1110_v61 = vmul.f32 %v2780_v17, %v1045_v27  ;;  %vm1115_vm10 = vweird.f32 %v2780_v17 }
 0x1eb   : > { %2781 = vrcp.f32 %v1046_v56  ;;  %v1034_v62 = vsel %vm896_vm1, %v3644_v57, 0.0  ;;  %v1107_v0 = vsel %vm1104_vm9, %v1106_v59, %v1102_v60  ;;  %vm1116_vm12 = vmor %vm1114_vm11, %vm1115_vm10  ;;  %vm1119_vm1 = vcmp.eq.f32.partialorder %v1118_v23, 8.507059e+37 }
 0x1ec   : > { %v1031_v42 = vadd.f32 %v1030_v40, %v1029_v55  ;;  %v1035_v1 = vrot.slane %v1034_v62, 4  ;;  %v1108_v41 = vmul.f32 %v1107_v0, %v3573_v58  ;;  %v1111_v3 = vsub.f32 1.0, %v1110_v61 }
 0x1ed   : > { %v1135_v22 = vand.u32 2147483648, %v1046_v56  ;;  %v1133_v18 = vand.u32 2147483647, %v1046_v56  ;;  %vm1129_vm14 = vweird.f32 %v1046_v56  ;;  %vm1293_vm10 = vcmask 1041409  }
 0x1ee   : > { %v1032_v11 = vrot.slane %v1031_v42, 1  ;;  %v1036_v54 = vadd.f32 %v1035_v1, %v1034_v62  ;;  %1186 = vperm.xlu2 %2719, %v1108_v41   ;;  %v1112_v7 = vmul.f32 %v2780_v17, %v1111_v3  ;;  %v1279_v1 = vld [vmem:[#allocation6 + $0x70] sm:$0xff]  ;;  %v1277_v41 = vld [vmem:[#allocation6 + $0x60] sm:$0xff]  ;;  %v1276_v3 = vld [vmem:[#allocation6 + $0x58] sm:$0xff]  ;;  %vm1295_vm11 = vcmask 1042434  }
 0x1ef   : > { %v1136_v29 = vor.u32 1.1754944e-38, %v1135_v22  ;;  %vm1134_vm0 = vcmp.eq.f32.partialorder %v1133_v18, 8.507059e+37  ;;  %v1267_v22 = vld [vmem:[#allocation6 + $0x10] sm:$0xff] }
 0x1f0   : > { %v1033_v8 = vadd.f32 %v1032_v11, %v1031_v42  ;;  %v1037_v48 = vrot.slane %v1036_v54, 2  ;;  %v1113_v4 = vadd.f32 %v2780_v17, %v1112_v7  ;;  %v1280_v42 = vld [vmem:[#allocation6 + $0x78] sm:$0xff]  ;;  %v1274_v11 = vld [vmem:[#allocation6 + $0x48] sm:$0xff] }
 0x1f1   : > { %v2782_v49 = vpop.eup %2781  ;;  %1308 = vmatpush.msra.mxu2 %v1280_v42  ;;  %v1336_v42 = vld [vmem:[#allocation8 + $0x38] sm:$0xff] }
 0x1f2   : > { %v1047_v9 = vmax.f32 %v1033_v8, 1e-30  ;;  %v1038_v10 = vadd.f32 %v1037_v48, %v1036_v54  ;;  %v1117_v16 = vsel %vm1116_vm12, %v2780_v17, %v1113_v4  ;;  %v1125_v58 = vmul.f32 %v2782_v49, %v1046_v56  ;;  %v1273_v54 = vld [vmem:[#allocation6 + $0x40] sm:$0xff]  ;;  %v1272_v48 = vld [vmem:[#allocation6 + $0x38] sm:$0xff] }
 0x1f3   : > { %v1122_v19 = vsel %vm1119_vm1, %v1121_v2, %v1117_v16  ;;  %vm1130_vm13 = vweird.f32 %v2782_v49  ;;  %1309 = vmatpush.msra.mxu2 %v1279_v1  ;;  %v1270_v16 = vld [vmem:[#allocation6 + $0x28] sm:$0xff]  ;;  %vm1297_vm12 = vcmask 1043459   ;;  %vm1299_vm1 = vcmask 1044484  }
 0x1f4   : > { %2783 = vrcp.f32 %v1047_v9  ;;  %v1039_v20 = vrot.slane %v1038_v10, 1  ;;  %v1123_v47 = vmul.f32 %v1122_v19, %v3600_v26  ;;  %v1126_v21 = vsub.f32 1.0, %v1125_v58  ;;  %vm1131_vm15 = vmor %vm1129_vm14, %vm1130_vm13  ;;  %v1269_v58 = vld [vmem:[#allocation6 + $0x20] sm:$0xff] }
 0x1f5   : > { %v1150_v43 = vand.u32 2147483648, %v1047_v9  ;;  %v1148_v44 = vand.u32 2147483647, %v1047_v9  ;;  %vm1144_vm3 = vweird.f32 %v1047_v9  ;;  %vm1301_vm13 = vcmask 1045509  }
 0x1f6   : > { %v1040_v24 = vadd.f32 %v1039_v20, %v1038_v10  ;;  %1191 = vperm.xlu2 %2719, %v1123_v47   ;;  %v1127_v12 = vmul.f32 %v2782_v49, %v1126_v21  ;;  %v1268_v21 = vld [vmem:[#allocation6 + $0x18] sm:$0xff]  ;;  %vm1303_vm14 = vcmask 1046534  }
 0x1f7   : > { %v1151_v52 = vor.u32 1.1754944e-38, %v1150_v43  ;;  %vm1149_vm5 = vcmp.eq.f32.partialorder %v1148_v44, 8.507059e+37 }
 0x1f8   : > { %v1048_v27 = vmax.f32 %v1040_v24, 1e-30  ;;  %v1128_v28 = vadd.f32 %v2782_v49, %v1127_v12  ;;  %v1343_v12 = vld [vmem:[#allocation8 + $0x70] sm:$0xff] }
 0x1fa   : > { %v2784_v30 = vpop.eup %2783  ;;  %2785 = vrcp.f32 %v1048_v27  ;;  %v1132_v15 = vsel %vm1131_vm15, %v2782_v49, %v1128_v28  ;;  %v1165_v25 = vand.u32 2147483648, %v1048_v27  ;;  %v1163_v56 = vand.u32 2147483647, %v1048_v27 }
 0x1fb   : > { %v1137_v63 = vsel %vm1134_vm0, %v1136_v29, %v1132_v15  ;;  %v1140_v31 = vmul.f32 %v2784_v30, %v1047_v9  ;;  %vm1145_vm2 = vweird.f32 %v2784_v30  ;;  %vm1159_vm7 = vweird.f32 %v1048_v27  ;;  %v1271_v9 = vld [vmem:[#allocation6 + $0x30] sm:$0xff] }
 0x1fc   : > { %v1138_v26 = vmul.f32 %v1137_v63, %v3619_v5  ;;  %vm1146_vm4 = vmor %vm1144_vm3, %vm1145_vm2  ;;  %v1166_v40 = vor.u32 1.1754944e-38, %v1165_v25  ;;  %vm1164_vm9 = vcmp.eq.f32.partialorder %v1163_v56, 8.507059e+37  ;;  %vm1305_vm15 = vcmask 1047559  }
 0x1fd   : > { %v1141_v14 = vsub.f32 1.0, %v1140_v31  ;;  %v1265_v31 = vld [vmem:[#allocation6] sm:$0xff] }
 0x1fe   : > { %1196 = vperm.xlu1 %2721, %v1138_v26  }
 0x1ff   : > { %v1142_v13 = vmul.f32 %v2784_v30, %v1141_v14 }
 0x200   : > { %v2786_v50 = vpop.eup %2785 }
 0x201   : > { %v1143_v51 = vadd.f32 %v2784_v30, %v1142_v13  ;;  %v1155_v46 = vmul.f32 %v2786_v50, %v1048_v27  ;;  %vm1160_vm6 = vweird.f32 %v2786_v50  ;;  %v1341_v13 = vld [vmem:[#allocation8 + $0x60] sm:$0xff] }
 0x202   : > { %vm1161_vm8 = vmor %vm1159_vm7, %vm1160_vm6 }
 0x203   : > { %v1147_v45 = vsel %vm1146_vm4, %v2784_v30, %v1143_v51  ;;  %v1156_v53 = vsub.f32 1.0, %v1155_v46  ;;  %v1266_v30 = vld [vmem:[#allocation6 + $0x8] sm:$0xff]  ;;  %v1340_v51 = vld [vmem:[#allocation8 + $0x58] sm:$0xff] }
 0x204   : > { %v1152_v55 = vsel %vm1149_vm5, %v1151_v52, %v1147_v45 }
 0x205   : > { %v1153_v17 = vmul.f32 %v1152_v55, %v3635_v39  ;;  %v1157_v5 = vmul.f32 %v2786_v50, %v1156_v53  ;;  %v1278_v39 = vld [vmem:[#allocation6 + $0x68] sm:$0xff]  ;;  %v1339_v55 = vld [vmem:[#allocation8 + $0x50] sm:$0xff] }
 0x206   : > { %1310 = vmatpush.msra.mxu2 %v1278_v39 }
 0x207   : > { %1201 = vperm.xlu2 %2719, %v1153_v17   ;;  %v1158_v59 = vadd.f32 %v2786_v50, %v1157_v5  ;;  %v1338_v5 = vld [vmem:[#allocation8 + $0x48] sm:$0xff] }
 0x208   : > { %1311 = vmatpush.msra.mxu2 %v1277_v41 }
 0x209   : > { %v1162_v60 = vsel %vm1161_vm8, %v2786_v50, %v1158_v59 }
 0x20a   : > { %v1167_v61 = vsel %vm1164_vm9, %v1166_v40, %v1162_v60  ;;  %1312 = vmatpush.msra.mxu2 %v1276_v3 }
 0x20b   : > { %v1168_v62 = vmul.f32 %v1167_v61, %v3644_v57  ;;  %v1337_v61 = vld [vmem:[#allocation8 + $0x40] sm:$0xff] }
 0x20c   : > { %1313 = vmatpush.msra.mxu2 %v1275_v6 }
 0x20d   : > { %1206 = vperm.xlu1 %2721, %v1168_v62  }
 0x20e   : > { %1314 = vmatpush.msra.mxu2 %v1274_v11  ;;  %v1335_v11 = vld [vmem:[#allocation8 + $0x30] sm:$0xff] }
 0x210   : > { %1315 = vmatpush.msra.mxu2 %v1273_v54 }
 0x212   : > { %1316 = vmatpush.msra.mxu2 %v1272_v48  ;;  %v1334_v48 = vld [vmem:[#allocation8 + $0x28] sm:$0xff] }
 0x214   : > { %1317 = vmatpush.msra.mxu2 %v1271_v9 }
 0x216   : > { %1318 = vmatpush.msra.mxu2 %v1270_v16 }
 0x218   : > { %1319 = vmatpush.msra.mxu2 %v1269_v58  ;;  %v1333_v58 = vld [vmem:[#allocation8 + $0x20] sm:$0xff] }
 0x21a   : > { %1320 = vmatpush.msra.mxu2 %v1268_v21 }
 0x21c   : > { %1321 = vmatpush.msra.mxu2 %v1267_v22 }
 0x21e   : > { %1322 = vmatpush.msra.mxu2 %v1266_v30 }
 0x220   : > { %1323 = vmatpush.msra.mxu2 %v1265_v31  ;;  %v1329_v31 = vld [vmem:[#allocation8] sm:$0xff] }
 0x230   : > { %v1172_v0 = vpop.permute.xlu2 %1171 }
 0x231   : > { %v1209_v49 = vmul.f32 %v1172_v0, %v3436_v32  ;;  %v1344_v32 = vld [vmem:[#allocation8 + $0x78] sm:$0xff] }
 0x232   : > { %1345 = vmatpush.msra.mxu3 %v1344_v32 }
 0x233   : > { %v1217_v20 = vrot.slane %v1209_v49, 4 }
 0x234   : > { %1346 = vmatpush.msra.mxu3 %v1343_v12 }
 0x235   : > { %v1218_v18 = vadd.f32 %v1217_v20, %v1209_v49 }
 0x237   : > { %v1219_v44 = vrot.slane %v1218_v18, 2 }
 0x239   : > { %v1220_v25 = vadd.f32 %v1219_v44, %v1218_v18  ;;  %v3121_v44 = vmov 0.0  }
 0x23a   : > { %1373 = vst [vmem:[#allocation3] sm:$0xff] %v3121_v44 }
 0x23b   : > { %v1221_v62 = vrot.slane %v1220_v25, 1 }
 0x23d   : > { %v1222_v54 = vadd.f32 %v1221_v62, %v1220_v25 }
 0x248   : > { %v1187_v23 = vpop.permute.xlu2 %1186 }
 0x249   : > { %v1212_v47 = vmul.f32 %v1187_v23, %v3451_v35  ;;  %v1342_v35 = vld [vmem:[#allocation8 + $0x68] sm:$0xff] }
 0x24a   : > { %1347 = vmatpush.msra.mxu3 %v1342_v35  ;;  %v1331_v35 = vld [vmem:[#allocation8 + $0x10] sm:$0xff] }
 0x24b   : > { %v1235_v27 = vrot.slane %v1212_v47, 4 }
 0x24c   : > { %1348 = vmatpush.msra.mxu3 %v1341_v13 }
 0x24d   : > { %v1236_v50 = vadd.f32 %v1235_v27, %v1212_v47  ;;  %v1332_v47 = vld [vmem:[#allocation8 + $0x18] sm:$0xff] }
 0x24e   : > { %1349 = vmatpush.msra.mxu3 %v1340_v51  ;;  %v1369_v51 = vld [vmem:[%s561_s7] sm:$0xff] }
 0x24f   : > { %v1237_v17 = vrot.slane %v1236_v50, 2 }
 0x250   : > { %v1192_v2 = vpop.permute.xlu2 %1191  ;;  %1350 = vmatpush.msra.mxu3 %v1339_v55 }
 0x251   : > { %v1238_v0 = vadd.f32 %v1237_v17, %v1236_v50  ;;  %v1367_v50 = vld [vmem:[%s671_s13] sm:$0xff] }
 0x252   : > { %v1177_v7 = vpop.permute.xlu0 %1176  ;;  %1351 = vmatpush.msra.mxu3 %v1338_v5 }
 0x253   : > { %v1210_v8 = vmul.f32 %v1177_v7, %v3441_v33  ;;  %v1239_v7 = vrot.slane %v1238_v0, 1 }
 0x254   : > { %1352 = vmatpush.msra.mxu3 %v1337_v61 }
 0x255   : > { %v1223_v10 = vrot.slane %v1210_v8, 4 }
 0x256   : > { %1353 = vmatpush.msra.mxu3 %v1336_v42 }
 0x257   : > { %v1182_v57 = vpop.permute.xlu1 %1181  ;;  %v1224_v33 = vadd.f32 %v1223_v10, %v1210_v8 }
 0x258   : > { %v1211_v4 = vmul.f32 %v1182_v57, %v3446_v34  ;;  %v1213_v34 = vmul.f32 %v1192_v2, %v3456_v36  ;;  %v2787_v57 = vld [vmem:[%s3419_s2 + $0x38] sm:$0xff]  ;;  %1354 = vmatpush.msra.mxu3 %v1335_v11 }
 0x259   : > { %v1225_v63 = vrot.slane %v1224_v33, 2 }
 0x25a   : > { %v1229_v19 = vrot.slane %v1211_v4, 4  ;;  %v1241_v26 = vrot.slane %v1213_v34, 4  ;;  %1355 = vmatpush.msra.mxu3 %v1334_v48 }
 0x25b   : > { %v1226_v46 = vadd.f32 %v1225_v63, %v1224_v33  ;;  %v1330_v63 = vld [vmem:[#allocation8 + $0x8] sm:$0xff] }
 0x25c   : > { %v1230_v24 = vadd.f32 %v1229_v19, %v1211_v4  ;;  %v1240_v19 = vadd.f32 %v1239_v7, %v1238_v0  ;;  %1356 = vmatpush.msra.mxu3 %v1333_v58 }
 0x25e   : > { %v1231_v14 = vrot.slane %v1230_v24, 2  ;;  %1357 = vmatpush.msra.mxu3 %v1332_v47 }
 0x260   : > { %v1232_v45 = vadd.f32 %v1231_v14, %v1230_v24  ;;  %1358 = vmatpush.msra.mxu3 %v1331_v35 }
 0x261   : > { %v1202_v28 = vpop.permute.xlu2 %1201 }
 0x262   : > { %v1215_v36 = vmul.f32 %v1202_v28, %v3466_v38  ;;  %v1227_v38 = vrot.slane %v1226_v46, 1  ;;  %v1233_v40 = vrot.slane %v1232_v45, 1  ;;  %1359 = vmatpush.msra.mxu3 %v1330_v63 }
 0x264   : > { %v1253_v53 = vrot.slane %v1215_v36, 4  ;;  %v1228_v1 = vadd.f32 %v1227_v38, %v1226_v46  ;;  %v1234_v3 = vadd.f32 %v1233_v40, %v1232_v45  ;;  %1360 = vmatpush.msra.mxu3 %v1329_v31 }
 0x266   : > { %v1254_v60 = vadd.f32 %v1253_v53, %v1215_v36  ;;  %v1294_v4 = vsel %vm1293_vm10, %v1228_v1, %v1222_v54 }
 0x267   : > { %v1296_v10 = vsel %vm1295_vm11, %v1234_v3, %v1294_v4 }
 0x268   : > { %v1255_v23 = vrot.slane %v1254_v60, 2  ;;  %v1298_v22 = vsel %vm1297_vm12, %v1240_v19, %v1296_v10 }
 0x26a   : > { %v1256_v16 = vadd.f32 %v1255_v23, %v1254_v60 }
 0x26c   : > { %v1257_v24 = vrot.slane %v1256_v16, 1 }
 0x26e   : > { %v1258_v28 = vadd.f32 %v1257_v24, %v1256_v16 }
 0x270   : > { %v1197_v29 = vpop.permute.xlu1 %1196 }
 0x271   : > { %v1214_v15 = vmul.f32 %v1197_v29, %v3461_v37  ;;  %v1242_v37 = vadd.f32 %v1241_v26, %v1213_v34  ;;  %v2722_v26 = vld [vmem:[%s4012_s0] ss:$0 sm:$0xff] }
 0x273   : > { %v1247_v43 = vrot.slane %v1214_v15, 4  ;;  %v1243_v59 = vrot.slane %v1242_v37, 2 }
 0x275   : > { %v1248_v52 = vadd.f32 %v1247_v43, %v1214_v15  ;;  %v1244_v41 = vadd.f32 %v1243_v59, %v1242_v37 }
 0x277   : > { %v1249_v56 = vrot.slane %v1248_v52, 2  ;;  %v1245_v9 = vrot.slane %v1244_v41, 1 }
 0x279   : > { %v1250_v39 = vadd.f32 %v1249_v56, %v1248_v52  ;;  %v1246_v34 = vadd.f32 %v1245_v9, %v1244_v41 }
 0x27b   : > { %v1251_v49 = vrot.slane %v1250_v39, 1  ;;  %v1300_v12 = vsel %vm1299_vm1, %v1246_v34, %v1298_v22 }
 0x27d   : > { %v1252_v21 = vadd.f32 %v1251_v49, %v1250_v39 }
 0x27f   : > { %v1207_v6 = vpop.permute.xlu1 %1206  ;;  %v1302_v27 = vsel %vm1301_vm13, %v1252_v21, %v1300_v12 }
 0x280   : > { %v1216_v8 = vmul.f32 %v2787_v57, %v1207_v6  ;;  %v1304_v30 = vsel %vm1303_vm14, %v1258_v28, %v1302_v27 }
 0x282   : > { %v1259_v2 = vrot.slane %v1216_v8, 4 }
 0x284   : > { %v1260_v20 = vadd.f32 %v1259_v2, %v1216_v8 }
 0x286   : > { %v1261_v33 = vrot.slane %v1260_v20, 2 }
 0x288   : > { %v1262_v32 = vadd.f32 %v1261_v33, %v1260_v20 }
 0x28a   : > { %v1263_v18 = vrot.slane %v1262_v32, 1 }
 0x28c   : > { %v1264_v29 = vadd.f32 %v1263_v18, %v1262_v32 }
 0x28e   : > { %v1306_v15 = vsel %vm1305_vm15, %v1264_v29, %v1304_v30 }
 0x28f   : > { %1324 = vmatmul.f32.vlgmr.msra.gmra.mxu2 %v1306_v15 }
 0x312   : > { %v1325_v14 = vpop.f32.mrf.mxu2 }
 0x313   : > { %v1326_v36 = vadd.f32 %v2722_v26, %v1325_v14 }
 0x315   : > { %v1328_v43 = vmax.f32 %v1326_v36, 0.0 }
 0x317   : > { %1361 = vmatmul.f32.vlgmr.msra.gmra.mxu3 %v1328_v43 }
 0x39a   : > { %v1362_v13 = vpop.f32.mrf.mxu3 }
 0x39b   : > { %1365 = vrot.lane.b32.xlu0 %v1362_v13, %s3120_s30  ;;  %v1368_v52 = vmul.f32 %v1367_v50, %v1362_v13 }
 0x40d   : > { %v1366_v46 = vpop.permute.xlu0 %1365 }
 0x40e   : > { %v1370_v37 = vmul.f32 %v1369_v51, %v1366_v46 }
 0x410   : > { %v1371_v45 = vadd.f32 %v1370_v37, %v1368_v52 }
 0x412   : > { %1372 = vst [vmem:[#allocation2] sm:$0xff] %v1371_v45 }
 0x413 PF: > { %v2473_v53 = vld [vmem:[%s3395_s19 + $0x1c0] sm:$0xf]  ;;  %v2564_v25 = vld [vmem:[%s3395_s19 + $0x1c4] sm:$0xf]  ;;  %v2481_v38 = vld [vmem:[%s3395_s19 + $0x1c8] sm:$0xf] }
 0x414   : > { %v2568_v55 = vld [vmem:[%s3395_s19 + $0x1dc] sm:$0xf0]  ;;  %v2475_v5 = vld [vmem:[%s3395_s19 + $0x1e0] sm:$0xf0]  ;;  %v2569_v56 = vld [vmem:[%s3395_s19 + $0x1e4] sm:$0xf0] }
 0x415   : > { %v2474_v17 = vor.u32 %v2568_v55, %v2473_v53  ;;  %v2478_v59 = vor.u32 %v2564_v25, %v2475_v5  ;;  %v2482_v40 = vor.u32 %v2569_v56, %v2481_v38  ;;  %v2565_v60 = vld [vmem:[%s3395_s19 + $0x1cc] sm:$0xf]  ;;  %v2441_v62 = vld [vmem:[%s3395_s19 + $0x180] sm:$0xf]  ;;  %v2556_v1 = vld [vmem:[%s3395_s19 + $0x184] sm:$0xf] }
 0x416   : > { %v2483_v61 = vld [vmem:[%s3395_s19 + $0x1e8] sm:$0xf0]  ;;  %v2560_v42 = vld [vmem:[%s3395_s19 + $0x19c] sm:$0xf0]  ;;  %v2443_v39 = vld [vmem:[%s3395_s19 + $0x1a0] sm:$0xf0] }
 0x417   : > { %1778 = vmatpush.bf16.msra.mxu0 %v2474_v17  ;;  %v2486_v0 = vor.u32 %v2565_v60, %v2483_v61  ;;  %1791 = vmatpush.bf16.msra.mxu1 %v2478_v59  ;;  %v2442_v41 = vor.u32 %v2560_v42, %v2441_v62  ;;  %v2446_v3 = vor.u32 %v2556_v1, %v2443_v39  ;;  %v2449_v23 = vld [vmem:[%s3395_s19 + $0x188] sm:$0xf]  ;;  %v2557_v11 = vld [vmem:[%s3395_s19 + $0x18c] sm:$0xf]  ;;  %v2409_v57 = vld [vmem:[%s3395_s19 + $0x140] sm:$0xf] }
 0x418   : > { %1804 = vmatpush.bf16.msra.mxu2 %v2482_v40  ;;  %v2561_v6 = vld [vmem:[%s3395_s19 + $0x1a4] sm:$0xf0]  ;;  %v2451_v7 = vld [vmem:[%s3395_s19 + $0x1a8] sm:$0xf0]  ;;  %v2552_v8 = vld [vmem:[%s3395_s19 + $0x15c] sm:$0xf0] }
 0x419   : > { %1817 = vmatpush.bf16.msra.mxu3 %v2486_v0  ;;  %v2450_v54 = vor.u32 %v2561_v6, %v2449_v23  ;;  %v2454_v48 = vor.u32 %v2557_v11, %v2451_v7  ;;  %v2548_v4 = vld [vmem:[%s3395_s19 + $0x144] sm:$0xf]  ;;  %v2417_v2 = vld [vmem:[%s3395_s19 + $0x148] sm:$0xf]  ;;  %v2410_v9 = vor.u32 %v2552_v8, %v2409_v57  ;;  %v2549_v16 = vld [vmem:[%s3395_s19 + $0x14c] sm:$0xf] }
 0x41a   : > { %v2411_v49 = vld [vmem:[%s3395_s19 + $0x160] sm:$0xf0]  ;;  %v2553_v10 = vld [vmem:[%s3395_s19 + $0x164] sm:$0xf0]  ;;  %v2419_v58 = vld [vmem:[%s3395_s19 + $0x168] sm:$0xf0] }
 0x41b   : > { %1779 = vmatpush.bf16.msra.mxu0 %v2442_v41  ;;  %1792 = vmatpush.bf16.msra.mxu1 %v2446_v3  ;;  %v2414_v19 = vor.u32 %v2548_v4, %v2411_v49  ;;  %v2418_v20 = vor.u32 %v2553_v10, %v2417_v2  ;;  %v2377_v47 = vld [vmem:[%s3395_s19 + $0x100] sm:$0xf]  ;;  %v2540_v33 = vld [vmem:[%s3395_s19 + $0x104] sm:$0xf]  ;;  %v2422_v22 = vor.u32 %v2549_v16, %v2419_v58  ;;  %v2385_v24 = vld [vmem:[%s3395_s19 + $0x108] sm:$0xf] }
 0x41c   : > { %1805 = vmatpush.bf16.msra.mxu2 %v2450_v54  ;;  %v2544_v21 = vld [vmem:[%s3395_s19 + $0x11c] sm:$0xf0]  ;;  %v2379_v34 = vld [vmem:[%s3395_s19 + $0x120] sm:$0xf0]  ;;  %v2545_v32 = vld [vmem:[%s3395_s19 + $0x124] sm:$0xf0] }
 0x41d   : > { %1818 = vmatpush.bf16.msra.mxu3 %v2454_v48  ;;  %v2541_v12 = vld [vmem:[%s3395_s19 + $0x10c] sm:$0xf]  ;;  %v2378_v27 = vor.u32 %v2544_v21, %v2377_v47  ;;  %v2382_v28 = vor.u32 %v2540_v33, %v2379_v34  ;;  %v2386_v29 = vor.u32 %v2545_v32, %v2385_v24  ;;  %v2345_v30 = vld [vmem:[%s3395_s19 + $0xc0] sm:$0xf]  ;;  %v2532_v35 = vld [vmem:[%s3395_s19 + $0xc4] sm:$0xf] }
 0x41e   : > { %v2387_v18 = vld [vmem:[%s3395_s19 + $0x128] sm:$0xf0]  ;;  %v2536_v15 = vld [vmem:[%s3395_s19 + $0xdc] sm:$0xf0]  ;;  %v2347_v31 = vld [vmem:[%s3395_s19 + $0xe0] sm:$0xf0] }
 0x41f   : > { %1780 = vmatpush.bf16.msra.mxu0 %v2410_v9  ;;  %1793 = vmatpush.bf16.msra.mxu1 %v2414_v19  ;;  %v2390_v63 = vor.u32 %v2541_v12, %v2387_v18  ;;  %v2353_v26 = vld [vmem:[%s3395_s19 + $0xc8] sm:$0xf]  ;;  %v2533_v36 = vld [vmem:[%s3395_s19 + $0xcc] sm:$0xf]  ;;  %v2346_v13 = vor.u32 %v2536_v15, %v2345_v30  ;;  %v2350_v44 = vor.u32 %v2532_v35, %v2347_v31  ;;  %v2313_v51 = vld [vmem:[%s3395_s19 + $0x80] sm:$0xf] }
 0x420   : > { %1806 = vmatpush.bf16.msra.mxu2 %v2418_v20  ;;  %v2537_v14 = vld [vmem:[%s3395_s19 + $0xe4] sm:$0xf0]  ;;  %v2355_v43 = vld [vmem:[%s3395_s19 + $0xe8] sm:$0xf0]  ;;  %v2528_v46 = vld [vmem:[%s3395_s19 + $0x9c] sm:$0xf0] }
 0x421   : > { %1819 = vmatpush.bf16.msra.mxu3 %v2422_v22  ;;  %v2354_v50 = vor.u32 %v2537_v14, %v2353_v26  ;;  %v2524_v52 = vld [vmem:[%s3395_s19 + $0x84] sm:$0xf]  ;;  %v2358_v37 = vor.u32 %v2533_v36, %v2355_v43  ;;  %v2321_v53 = vld [vmem:[%s3395_s19 + $0x88] sm:$0xf]  ;;  %v2525_v25 = vld [vmem:[%s3395_s19 + $0x8c] sm:$0xf]  ;;  %v2314_v5 = vor.u32 %v2528_v46, %v2313_v51 }
 0x422   : > { %v2315_v45 = vld [vmem:[%s3395_s19 + $0xa0] sm:$0xf0]  ;;  %v2529_v55 = vld [vmem:[%s3395_s19 + $0xa4] sm:$0xf0]  ;;  %v2323_v17 = vld [vmem:[%s3395_s19 + $0xa8] sm:$0xf0] }
 0x423   : > { %1781 = vmatpush.bf16.msra.mxu0 %v2378_v27  ;;  %1794 = vmatpush.bf16.msra.mxu1 %v2382_v28  ;;  %v2318_v38 = vor.u32 %v2524_v52, %v2315_v45  ;;  %v2322_v56 = vor.u32 %v2529_v55, %v2321_v53  ;;  %v2281_v59 = vld [vmem:[%s3395_s19 + $0x40] sm:$0xf]  ;;  %v2516_v60 = vld [vmem:[%s3395_s19 + $0x44] sm:$0xf]  ;;  %v2326_v61 = vor.u32 %v2525_v25, %v2323_v17  ;;  %v2289_v0 = vld [vmem:[%s3395_s19 + $0x48] sm:$0xf] }
 0x424   : > { %1807 = vmatpush.bf16.msra.mxu2 %v2386_v29  ;;  %v2520_v40 = vld [vmem:[%s3395_s19 + $0x5c] sm:$0xf0]  ;;  %v2283_v62 = vld [vmem:[%s3395_s19 + $0x60] sm:$0xf0]  ;;  %v2521_v42 = vld [vmem:[%s3395_s19 + $0x64] sm:$0xf0] }
 0x425   : > { %1820 = vmatpush.bf16.msra.mxu3 %v2390_v63  ;;  %v2517_v1 = vld [vmem:[%s3395_s19 + $0x4c] sm:$0xf]  ;;  %v2282_v41 = vor.u32 %v2520_v40, %v2281_v59  ;;  %v2249_v3 = vld [vmem:[%s3395_s19] sm:$0xf]  ;;  %v2286_v6 = vor.u32 %v2516_v60, %v2283_v62  ;;  %v2290_v11 = vor.u32 %v2521_v42, %v2289_v0  ;;  %v2508_v54 = vld [vmem:[%s3395_s19 + $0x4] sm:$0xf] }
 0x426   : > { %v2291_v39 = vld [vmem:[%s3395_s19 + $0x68] sm:$0xf0]  ;;  %v2512_v23 = vld [vmem:[%s3395_s19 + $0x1c] sm:$0xf0]  ;;  %v2251_v7 = vld [vmem:[%s3395_s19 + $0x20] sm:$0xf0] }
 0x427   : > { %1782 = vmatpush.bf16.msra.mxu0 %v2346_v13  ;;  %1795 = vmatpush.bf16.msra.mxu1 %v2350_v44  ;;  %v2257_v57 = vld [vmem:[%s3395_s19 + $0x8] sm:$0xf]  ;;  %v2294_v8 = vor.u32 %v2517_v1, %v2291_v39  ;;  %v2509_v4 = vld [vmem:[%s3395_s19 + $0xc] sm:$0xf]  ;;  %v2489_v2 = vld [vmem:[%s3395_s19 + $0x1d0] sm:$0xf]  ;;  %v2250_v16 = vor.u32 %v2512_v23, %v2249_v3  ;;  %v2254_v47 = vor.u32 %v2508_v54, %v2251_v7 }
 0x428   : > { %1808 = vmatpush.bf16.msra.mxu2 %v2354_v50  ;;  %v2513_v48 = vld [vmem:[%s3395_s19 + $0x24] sm:$0xf0]  ;;  %v2259_v49 = vld [vmem:[%s3395_s19 + $0x28] sm:$0xf0]  ;;  %v2570_v9 = vld [vmem:[%s3395_s19 + $0x1ec] sm:$0xf0] }
 0x429   : > { %1821 = vmatpush.bf16.msra.mxu3 %v2358_v37  ;;  %v2566_v10 = vld [vmem:[%s3395_s19 + $0x1d4] sm:$0xf]  ;;  %v2497_v19 = vld [vmem:[%s3395_s19 + $0x1d8] sm:$0xf]  ;;  %v2258_v21 = vor.u32 %v2513_v48, %v2257_v57  ;;  %v2567_v33 = vld [vmem:[%s3395_s19 + $0x1dc] sm:$0xf]  ;;  %v2262_v24 = vor.u32 %v2509_v4, %v2259_v49  ;;  %v2490_v32 = vor.u32 %v2570_v9, %v2489_v2 }
 0x42a   : > { %v2491_v58 = vld [vmem:[%s3395_s19 + $0x1f0] sm:$0xf0]  ;;  %v2571_v20 = vld [vmem:[%s3395_s19 + $0x1f4] sm:$0xf0]  ;;  %v2499_v22 = vld [vmem:[%s3395_s19 + $0x1f8] sm:$0xf0] }
 0x42b   : > { %1783 = vmatpush.bf16.msra.mxu0 %v2314_v5  ;;  %1796 = vmatpush.bf16.msra.mxu1 %v2318_v38  ;;  %v1374_v34 = vld [vmem:[#allocation2] sm:$0xff]  ;;  %v2494_v12 = vor.u32 %v2566_v10, %v2491_v58  ;;  %v2498_v18 = vor.u32 %v2571_v20, %v2497_v19  ;;  %v2457_v27 = vld [vmem:[%s3395_s19 + $0x190] sm:$0xf]  ;;  %v2558_v29 = vld [vmem:[%s3395_s19 + $0x194] sm:$0xf]  ;;  %v2502_v30 = vor.u32 %v2567_v33, %v2499_v22 }
 0x42c   : > { %1809 = vmatpush.bf16.msra.mxu2 %v2322_v56  ;;  %v2562_v28 = vld [vmem:[%s3395_s19 + $0x1ac] sm:$0xf0]  ;;  %v3746_v15 = vpack.c.bf16 %v1374_v34, %v1374_v34  ;;  %v2459_v35 = vld [vmem:[%s3395_s19 + $0x1b0] sm:$0xf0]  ;;  %v2465_v63 = vld [vmem:[%s3395_s19 + $0x198] sm:$0xf] }
 0x42d   : > { %1822 = vmatpush.bf16.msra.mxu3 %v2326_v61  ;;  %v2563_v31 = vld [vmem:[%s3395_s19 + $0x1b4] sm:$0xf0]  ;;  %v2559_v26 = vld [vmem:[%s3395_s19 + $0x19c] sm:$0xf]  ;;  %v2458_v36 = vor.u32 %v2562_v28, %v2457_v27  ;;  %v2462_v43 = vor.u32 %v2558_v29, %v2459_v35  ;;  %v2425_v44 = vld [vmem:[%s3395_s19 + $0x150] sm:$0xf] }
 0x42e   : > { %v2467_v14 = vld [vmem:[%s3395_s19 + $0x1b8] sm:$0xf0]  ;;  %v2466_v13 = vor.u32 %v2563_v31, %v2465_v63  ;;  %v2554_v50 = vld [vmem:[%s3395_s19 + $0x16c] sm:$0xf0]  ;;  %v2550_v51 = vld [vmem:[%s3395_s19 + $0x154] sm:$0xf] }
 0x42f   : > { %1784 = vmatpush.bf16.msra.mxu0 %v2282_v41  ;;  %1797 = vmatpush.bf16.msra.mxu1 %v2286_v6  ;;  %v2470_v46 = vor.u32 %v2559_v26, %v2467_v14  ;;  %v2427_v52 = vld [vmem:[%s3395_s19 + $0x170] sm:$0xf0]  ;;  %v2433_v37 = vld [vmem:[%s3395_s19 + $0x158] sm:$0xf]  ;;  %v2551_v53 = vld [vmem:[%s3395_s19 + $0x15c] sm:$0xf]  ;;  %v2426_v25 = vor.u32 %v2554_v50, %v2425_v44 }
 0x430   : > { %1810 = vmatpush.bf16.msra.mxu2 %v2290_v11  ;;  %v2555_v45 = vld [vmem:[%s3395_s19 + $0x174] sm:$0xf0]  ;;  %v2435_v55 = vld [vmem:[%s3395_s19 + $0x178] sm:$0xf0]  ;;  %v2430_v17 = vor.u32 %v2550_v51, %v2427_v52  ;;  %v2393_v38 = vld [vmem:[%s3395_s19 + $0x110] sm:$0xf] }
 0x431   : > { %1823 = vmatpush.bf16.msra.mxu3 %v2294_v8  ;;  %v2434_v5 = vor.u32 %v2555_v45, %v2433_v37  ;;  %v2546_v56 = vld [vmem:[%s3395_s19 + $0x12c] sm:$0xf0]  ;;  %v2542_v59 = vld [vmem:[%s3395_s19 + $0x114] sm:$0xf]  ;;  %v2438_v40 = vor.u32 %v2551_v53, %v2435_v55  ;;  %v2401_v61 = vld [vmem:[%s3395_s19 + $0x118] sm:$0xf] }
 0x432   : > { %v2395_v60 = vld [vmem:[%s3395_s19 + $0x130] sm:$0xf0]  ;;  %v2547_v62 = vld [vmem:[%s3395_s19 + $0x134] sm:$0xf0]  ;;  %v2543_v0 = vld [vmem:[%s3395_s19 + $0x11c] sm:$0xf]  ;;  %v2394_v39 = vor.u32 %v2546_v56, %v2393_v38 }
 0x433   : > { %1785 = vmatpush.bf16.msra.mxu0 %v2250_v16  ;;  %1798 = vmatpush.bf16.msra.mxu1 %v2254_v47  ;;  %v2403_v42 = vld [vmem:[%s3395_s19 + $0x138] sm:$0xf0]  ;;  %v1901_v1 = vld [vmem:[%s655_s4] sm:$0xff]  ;;  %v3122_v41 = vmov 0   ;;  %v2398_v3 = vor.u32 %v2542_v59, %v2395_v60  ;;  %v2402_v23 = vor.u32 %v2547_v62, %v2401_v61  ;;  %v2361_v6 = vld [vmem:[%s3395_s19 + $0xd0] sm:$0xf] }
 0x434   : > { %1811 = vmatpush.bf16.msra.mxu2 %v2258_v21  ;;  %2788 = vset.pattern.permute.xlu0 %v3122_v41  ;;  %v2538_v11 = vld [vmem:[%s3395_s19 + $0xec] sm:$0xf0]  ;;  %v2534_v54 = vld [vmem:[%s3395_s19 + $0xd4] sm:$0xf]  ;;  %v2406_v7 = vor.u32 %v2543_v0, %v2403_v42  ;;  %v2369_v8 = vld [vmem:[%s3395_s19 + $0xd8] sm:$0xf] }
 0x435   : > { %1824 = vmatpush.bf16.msra.mxu3 %v2262_v24  ;;  %v2363_v57 = vld [vmem:[%s3395_s19 + $0xf0] sm:$0xf0]  ;;  %v2539_v48 = vld [vmem:[%s3395_s19 + $0xf4] sm:$0xf0]  ;;  %1903 = vperm.xlu0 %2788, %v1901_v1   ;;  %v2535_v4 = vld [vmem:[%s3395_s19 + $0xdc] sm:$0xf]  ;;  %v2362_v2 = vor.u32 %v2538_v11, %v2361_v6 }
 0x436   : > { %1786 = vmatmul.bf16.vlgmr.msra.gmra.mxu0 %v3746_v15  ;;  %1799 = vmatmul.bf16.vlgmr.msra.gmra.mxu1 %v3746_v15  ;;  %v2371_v49 = vld [vmem:[%s3395_s19 + $0xf8] sm:$0xf0]  ;;  %v2366_v9 = vor.u32 %v2534_v54, %v2363_v57  ;;  %v2370_v10 = vor.u32 %v2539_v48, %v2369_v8  ;;  %v2329_v16 = vld [vmem:[%s3395_s19 + $0x90] sm:$0xf]  ;;  %v2526_v19 = vld [vmem:[%s3395_s19 + $0x94] sm:$0xf] }
 0x437   : > { %1830 = vmatpush.bf16.msrb.mxu0 %v2490_v32  ;;  %1843 = vmatpush.bf16.msrb.mxu1 %v2494_v12  ;;  %v2530_v58 = vld [vmem:[%s3395_s19 + $0xac] sm:$0xf0]  ;;  %v2374_v20 = vor.u32 %v2535_v4, %v2371_v49  ;;  %v2331_v47 = vld [vmem:[%s3395_s19 + $0xb0] sm:$0xf0]  ;;  %v2337_v21 = vld [vmem:[%s3395_s19 + $0x98] sm:$0xf] }
 0x438   : > { %1856 = vmatpush.bf16.msrb.mxu2 %v2498_v18  ;;  %1825 = vmatmul.bf16.vlgmr.msra.gmra.mxu3 %v3746_v15  ;;  %v2531_v33 = vld [vmem:[%s3395_s19 + $0xb4] sm:$0xf0]  ;;  %v2527_v22 = vld [vmem:[%s3395_s19 + $0x9c] sm:$0xf]  ;;  %v2330_v24 = vor.u32 %v2530_v58, %v2329_v16  ;;  %v2334_v32 = vor.u32 %v2526_v19, %v2331_v47  ;;  %v2297_v18 = vld [vmem:[%s3395_s19 + $0x50] sm:$0xf] }
 0x439   : > { %1869 = vmatpush.bf16.msrb.mxu3 %v2502_v30  ;;  %1812 = vmatmul.bf16.vlgmr.msra.gmra.mxu2 %v3746_v15  ;;  %v2339_v34 = vld [vmem:[%s3395_s19 + $0xb8] sm:$0xf0]  ;;  %v2338_v12 = vor.u32 %v2531_v33, %v2337_v21  ;;  %v2522_v27 = vld [vmem:[%s3395_s19 + $0x6c] sm:$0xf0]  ;;  %v2518_v28 = vld [vmem:[%s3395_s19 + $0x54] sm:$0xf] }
 0x43a   : > { %v2342_v29 = vor.u32 %v2527_v22, %v2339_v34  ;;  %v2299_v30 = vld [vmem:[%s3395_s19 + $0x70] sm:$0xf0]  ;;  %v2305_v35 = vld [vmem:[%s3395_s19 + $0x58] sm:$0xf]  ;;  %v2519_v31 = vld [vmem:[%s3395_s19 + $0x5c] sm:$0xf]  ;;  %v2298_v14 = vor.u32 %v2522_v27, %v2297_v18 }
 0x43b   : > { %1831 = vmatpush.bf16.msrb.mxu0 %v2458_v36  ;;  %1844 = vmatpush.bf16.msrb.mxu1 %v2462_v43  ;;  %v2523_v63 = vld [vmem:[%s3395_s19 + $0x74] sm:$0xf0]  ;;  %v2307_v26 = vld [vmem:[%s3395_s19 + $0x78] sm:$0xf0]  ;;  %v2302_v36 = vor.u32 %v2518_v28, %v2299_v30  ;;  %v2514_v44 = vld [vmem:[%s3395_s19 + $0x2c] sm:$0xf0] }
 0x43c   : > { %1857 = vmatpush.bf16.msrb.mxu2 %v2466_v13  ;;  %v2306_v43 = vor.u32 %v2523_v63, %v2305_v35  ;;  %v2265_v13 = vld [vmem:[%s3395_s19 + $0x10] sm:$0xf]  ;;  %v2510_v50 = vld [vmem:[%s3395_s19 + $0x14] sm:$0xf]  ;;  %v2310_v51 = vor.u32 %v2519_v31, %v2307_v26  ;;  %v2273_v52 = vld [vmem:[%s3395_s19 + $0x18] sm:$0xf] }
 0x43d   : > { %1870 = vmatpush.bf16.msrb.mxu3 %v2470_v46  ;;  %v2267_v46 = vld [vmem:[%s3395_s19 + $0x30] sm:$0xf0]  ;;  %v2515_v37 = vld [vmem:[%s3395_s19 + $0x34] sm:$0xf0]  ;;  %v2511_v45 = vld [vmem:[%s3395_s19 + $0x1c] sm:$0xf]  ;;  %v2266_v55 = vor.u32 %v2514_v44, %v2265_v13 }
 0x43e   : > { %v2275_v53 = vld [vmem:[%s3395_s19 + $0x38] sm:$0xf0]  ;;  %v3815_v38 = vld [vmem:[%s3401_s10] sm:$0xff]  ;;  %s4015_s19 = sld [smem:[#allocation21_spill]] }
 0x43f   : > { %1832 = vmatpush.bf16.msrb.mxu0 %v2426_v25  ;;  %1845 = vmatpush.bf16.msrb.mxu1 %v2430_v17  ;;  %v2270_v25 = vor.u32 %v2510_v50, %v2267_v46  ;;  %v2274_v17 = vor.u32 %v2515_v37, %v2273_v52  ;;  %v1442_v56 = vperm.slane %v3815_v38, 0  ;;  %v1444_v42 = vperm.slane %v3815_v38, 2 }
 0x440   : > { %1858 = vmatpush.bf16.msrb.mxu2 %v2434_v5  ;;  %v2278_v5 = vor.u32 %v2511_v45, %v2275_v53  ;;  %v1446_v21 = vperm.slane %v3815_v38, 4  ;;  %v1447_v22 = vperm.slane %v3815_v38, 5  ;;  %v1448_v31 = vperm.slane %v3815_v38, 6 }
 0x441   : > { %1871 = vmatpush.bf16.msrb.mxu3 %v2438_v40  ;;  %v1443_v40 = vperm.slane %v3815_v38, 1 }
 0x443   : > { %1833 = vmatpush.bf16.msrb.mxu0 %v2394_v39  ;;  %1846 = vmatpush.bf16.msrb.mxu1 %v2398_v3 }
 0x444   : > { %1859 = vmatpush.bf16.msrb.mxu2 %v2402_v23  ;;  %s2503_s10 = sshll.u32 %s4015_s19, 10  ;;  %p2504_p11 = scmp.ne.s32.totalorder %s4015_s19, 1 }
 0x445   : > { %1872 = vmatpush.bf16.msrb.mxu3 %v2406_v7 }
 0x447   : > { %1834 = vmatpush.bf16.msrb.mxu0 %v2362_v2  ;;  %1847 = vmatpush.bf16.msrb.mxu1 %v2366_v9 }
 0x448   : > { %1860 = vmatpush.bf16.msrb.mxu2 %v2370_v10 }
 0x449   : > { %1873 = vmatpush.bf16.msrb.mxu3 %v2374_v20 }
 0x44b   : > { %1835 = vmatpush.bf16.msrb.mxu0 %v2330_v24  ;;  %1848 = vmatpush.bf16.msrb.mxu1 %v2334_v32  ;;  %v1882_v24 = vlaneseq }
 0x44c   : > { %1861 = vmatpush.bf16.msrb.mxu2 %v2338_v12 }
 0x44d   : > { %1874 = vmatpush.bf16.msrb.mxu3 %v2342_v29  ;;  %v3841_v35 = vand.u32 127, %v1882_v24 }
 0x44f   : > { %1836 = vmatpush.bf16.msrb.mxu0 %v2298_v14  ;;  %1849 = vmatpush.bf16.msrb.mxu1 %v2302_v36  ;;  %v3845_v14 = vstv %s2503_s10 }
 0x450   : > { %1862 = vmatpush.bf16.msrb.mxu2 %v2306_v43  ;;  %v1449_v43 = vperm.slane %v3815_v38, 7  ;;  %v1893_v52 = vadd.s32 %v3845_v14, %v3841_v35 }
 0x451   : > { %1875 = vmatpush.bf16.msrb.mxu3 %v2310_v51 }
 0x453   : > { %1837 = vmatpush.bf16.msrb.mxu0 %v2266_v55  ;;  %1850 = vmatpush.bf16.msrb.mxu1 %v2270_v25 }
 0x454   : > { %1863 = vmatpush.bf16.msrb.mxu2 %v2274_v17  ;;  %v1884_v17 = vadd.s32 128, %v3841_v35 }
 0x455   : > { %1876 = vmatpush.bf16.msrb.mxu3 %v2278_v5 }
 0x456   : > { %1838 = vmatmul.bf16.vlgmr.msrb.gmra.mxu0 %v3746_v15  ;;  %1851 = vmatmul.bf16.vlgmr.msrb.gmra.mxu1 %v3746_v15 }
 0x457   : > { %1864 = vmatmul.bf16.vlgmr.msrb.gmra.mxu2 %v3746_v15 }
 0x458   : > { %1877 = vmatmul.bf16.vlgmr.msrb.gmra.mxu3 %v3746_v15  ;;  %v1445_v15 = vperm.slane %v3815_v38, 3 }
 0x4a7   : > { %v3852_v25 = vpop.permute.xlu0 %1903 }
 0x4a8   : > { %vm1905_vm0 = vcmp.eq.s32.totalorder %v1893_v52, %v3852_v25 }
 0x4b3   : > { %v1787_v59 = vpop.f32.mrf.mxu0  ;;  %v1800_v61 = vpop.f32.mrf.mxu1 }
 0x4b4   : > { %v3819_v60 = vadd.f32 %v1787_v59, %v1442_v56  ;;  %v3822_v0 = vadd.f32 %v1800_v61, %v1443_v40  ;;  %v1885_v40 = vadd.s32 256, %v3841_v35 }
 0x4b6   : > { %v1921_v62 = vand.u32 2147483647, %v3819_v60  ;;  %v1922_v41 = vand.u32 2147483647, %v3822_v0  ;;  %v1913_v59 = vmax.f32 %v3819_v60, 0.0 }
 0x4b8   : > { %v1929_v1 = vsub.f32 0.0, %v1921_v62  ;;  %v1930_v8 = vsub.f32 0.0, %v1922_v41  ;;  %v1886_v41 = vadd.s32 384, %v3841_v35 }
 0x4ba   : > { %v1937_v7 = vmul.f32 1.442695, %v1929_v1  ;;  %v1939_v2 = vmul.f32 1.442695, %v1930_v8 }
 0x4bb   : > { %v1826_v23 = vpop.f32.mrf.mxu3  ;;  %v1789_v6 = vpop.f32.mrf.mxu0 }
 0x4bc   : > { %v1813_v39 = vpop.f32.mrf.mxu2  ;;  %v1802_v11 = vpop.f32.mrf.mxu1  ;;  %v3830_v57 = vadd.f32 %v1826_v23, %v1445_v15  ;;  %2789 = vpow2.f32 %v1937_v7  ;;  %v1894_v15 = vadd.s32 %v3845_v14, %v1884_v17 }
 0x4bd   : > { %v3827_v3 = vadd.f32 %v1813_v39, %v1444_v42  ;;  %2791 = vpow2.f32 %v1939_v2 }
 0x4be   : > { %v1924_v4 = vand.u32 2147483647, %v3830_v57  ;;  %vm1906_vm2 = vcmp.eq.s32.totalorder %v1894_v15, %v3852_v25 }
 0x4bf   : > { %v1923_v54 = vand.u32 2147483647, %v3827_v3 }
 0x4c0   : > { %v1932_v16 = vsub.f32 0.0, %v1924_v4  ;;  %v1985_v4 = vsel %vm1905_vm0, %v3819_v60, 0.0  ;;  %v1896_v60 = vadd.s32 %v3845_v14, %v1886_v41 }
 0x4c1   : > { %v1931_v48 = vsub.f32 0.0, %v1923_v54  ;;  %v1895_v54 = vadd.s32 %v3845_v14, %v1885_v40 }
 0x4c2   : > { %v2790_v58 = vpop.eup %2789  ;;  %v1943_v19 = vmul.f32 1.442695, %v1932_v16  ;;  %v1915_v16 = vmax.f32 %v3827_v3, 0.0  ;;  %vm1908_vm4 = vcmp.eq.s32.totalorder %v1896_v60, %v3852_v25 }
 0x4c3   : > { %v1828_v9 = vpop.f32.mrf.mxu3  ;;  %v1941_v10 = vmul.f32 1.442695, %v1931_v48  ;;  %v1953_v20 = vadd.f32 1.0, %v2790_v58  ;;  %v2792_v47 = vpop.eup %2791  ;;  %v1914_v48 = vmax.f32 %v3822_v0, 0.0  ;;  %vm1907_vm3 = vcmp.eq.s32.totalorder %v1895_v54, %v3852_v25 }
 0x4c4   : > { %v1815_v49 = vpop.f32.mrf.mxu2  ;;  %v1954_v34 = vadd.f32 1.0, %v2792_v47 }
 0x4c5   : > { %2793 = vpow2.f32 %v1941_v10  ;;  %v1887_v49 = vadd.s32 512, %v3841_v35 }
 0x4c6   : > { %2795 = vpow2.f32 %v1943_v19 }
 0x4c7   : > { %2797 = vlog2.f32 %v1953_v20  ;;  %v1897_v24 = vadd.s32 %v3845_v14, %v1887_v49 }
 0x4c8   : > { %2799 = vlog2.f32 %v1954_v34 }
 0x4c9   : > { %vm1909_vm5 = vcmp.eq.s32.totalorder %v1897_v24, %v3852_v25 }
 0x4cb   : > { %v2794_v33 = vpop.eup %2793 }
 0x4cc   : > { %v1955_v12 = vadd.f32 1.0, %v2794_v33  ;;  %v2796_v30 = vpop.eup %2795 }
 0x4cd   : > { %v2798_v26 = vpop.eup %2797  ;;  %v1956_v44 = vadd.f32 1.0, %v2796_v30  ;;  %v1888_v30 = vadd.s32 640, %v3841_v35 }
 0x4ce   : > { %2801 = vlog2.f32 %v1955_v12  ;;  %v1962_v46 = vmul.f32 0.6931472, %v2798_v26  ;;  %v2800_v56 = vpop.eup %2799 }
 0x4cf   : > { %v1964_v6 = vmul.f32 0.6931472, %v2800_v56 }
 0x4d0   : > { %v1977_v1 = vadd.f32 %v1962_v46, %v1913_v59  ;;  %v1988_v59 = vsel %vm1908_vm4, %v3830_v57, 0.0 }
 0x4d2   : > { %v1993_v58 = vsub.f32 %v1977_v1, %v1985_v4 }
 0x4d3   : > { %v1839_v32 = vpop.f32.mrf.mxu0  ;;  %v1852_v27 = vpop.f32.mrf.mxu1 }
 0x4d4   : > { %v3835_v18 = vadd.f32 %v1839_v32, %v1446_v21  ;;  %v3838_v28 = vadd.f32 %v1852_v27, %v1447_v22  ;;  %v2802_v62 = vpop.eup %2801  ;;  %v2001_v21 = vld [vmem:[#allocation3] sm:$0xff]  ;;  %v1978_v22 = vadd.f32 %v1964_v6, %v1914_v48  ;;  %v1986_v27 = vsel %vm1906_vm2, %v3822_v0, 0.0 }
 0x4d5   : > { %v1966_v11 = vmul.f32 0.6931472, %v2802_v62  ;;  %v2002_v12 = vadd.f32 %v2001_v21, %v1993_v58  ;;  %v1889_v0 = vadd.s32 768, %v3841_v35 }
 0x4d6   : > { %v1925_v29 = vand.u32 2147483647, %v3835_v18  ;;  %v1926_v63 = vand.u32 2147483647, %v3838_v28  ;;  %v1994_v26 = vsub.f32 %v1978_v22, %v1986_v27  ;;  %v1917_v52 = vmax.f32 %v3835_v18, 0.0 }
 0x4d7   : > { %v1979_v34 = vadd.f32 %v1966_v11, %v1915_v16  ;;  %v1989_v40 = vsel %vm1909_vm5, %v3835_v18, 0.0  ;;  %v1918_v62 = vmax.f32 %v3838_v28, 0.0 }
 0x4d8   : > { %v1933_v36 = vsub.f32 0.0, %v1925_v29  ;;  %v1934_v13 = vsub.f32 0.0, %v1926_v63  ;;  %v1987_v29 = vsel %vm1907_vm3, %v3827_v3, 0.0 }
 0x4da   : > { %v1945_v50 = vmul.f32 1.442695, %v1933_v36  ;;  %v1865_v51 = vpop.f32.mrf.mxu2  ;;  %v1947_v37 = vmul.f32 1.442695, %v1934_v13  ;;  %v1995_v36 = vsub.f32 %v1979_v34, %v1987_v29 }
 0x4db   : > { %v3850_v45 = vadd.f32 %v1865_v51, %v1448_v31  ;;  %v1878_v53 = vpop.f32.mrf.mxu3  ;;  %v1841_v55 = vpop.f32.mrf.mxu0  ;;  %v1916_v31 = vmax.f32 %v3830_v57, 0.0  ;;  %v2003_v51 = vadd.f32 %v2002_v12, %v1994_v26 }
 0x4dc   : > { %2803 = vpow2.f32 %v1945_v50  ;;  %v3855_v5 = vadd.f32 %v1878_v53, %v1449_v43  ;;  %v1854_v38 = vpop.f32.mrf.mxu1  ;;  %v1898_v53 = vadd.s32 %v3845_v14, %v1888_v30 }
 0x4dd   : > { %2805 = vpow2.f32 %v1947_v37  ;;  %v1927_v61 = vand.u32 2147483647, %v3850_v45  ;;  %v2004_v55 = vadd.f32 %v2003_v51, %v1995_v36  ;;  %v1890_v38 = vadd.s32 896, %v3841_v35 }
 0x4de   : > { %2807 = vlog2.f32 %v1956_v44  ;;  %v1928_v42 = vand.u32 2147483647, %v3855_v5  ;;  %vm1910_vm6 = vcmp.eq.s32.totalorder %v1898_v53, %v3852_v25  ;;  %v1919_v57 = vmax.f32 %v3850_v45, 0.0 }
 0x4df   : > { %v1935_v39 = vsub.f32 0.0, %v1927_v61  ;;  %v1900_v15 = vadd.s32 %v3845_v14, %v1890_v38  ;;  %v1990_v11 = vsel %vm1910_vm6, %v3838_v28, 0.0  ;;  %v1920_v54 = vmax.f32 %v3855_v5, 0.0 }
 0x4e0   : > { %v1936_v23 = vsub.f32 0.0, %v1928_v42  ;;  %v1899_v42 = vadd.s32 %v3845_v14, %v1889_v0 }
 0x4e1   : > { %v1949_v7 = vmul.f32 1.442695, %v1935_v39  ;;  %vm1912_vm8 = vcmp.eq.s32.totalorder %v1900_v15, %v3852_v25 }
 0x4e2   : > { %v2804_v8 = vpop.eup %2803  ;;  %v1951_v2 = vmul.f32 1.442695, %v1936_v23  ;;  %v1867_v9 = vpop.f32.mrf.mxu2  ;;  %vm1911_vm7 = vcmp.eq.s32.totalorder %v1899_v42, %v3852_v25 }
 0x4e3   : > { %v2806_v10 = vpop.eup %2805  ;;  %v1957_v19 = vadd.f32 1.0, %v2804_v8  ;;  %2809 = vpow2.f32 %v1949_v7  ;;  %v1880_v20 = vpop.f32.mrf.mxu3  ;;  %v1991_v4 = vsel %vm1911_vm7, %v3850_v45, 0.0  ;;  %v1992_v9 = vsel %vm1912_vm8, %v3855_v5, 0.0 }
 0x4e4   : > { %v2808_v47 = vpop.eup %2807  ;;  %v1958_v33 = vadd.f32 1.0, %v2806_v10  ;;  %2811 = vpow2.f32 %v1951_v2 }
 0x4e5   : > { %2813 = vlog2.f32 %v1957_v19  ;;  %v1968_v32 = vmul.f32 0.6931472, %v2808_v47 }
 0x4e6   : > { %2815 = vlog2.f32 %v1958_v33 }
 0x4e7   : > { %v1980_v50 = vadd.f32 %v1968_v32, %v1916_v31 }
 0x4e9   : > { %v2810_v63 = vpop.eup %2809  ;;  %v1996_v61 = vsub.f32 %v1980_v50, %v1988_v59 }
 0x4ea   : > { %v2812_v43 = vpop.eup %2811  ;;  %v1959_v13 = vadd.f32 1.0, %v2810_v63 }
 0x4eb   : > { %v2814_v44 = vpop.eup %2813  ;;  %v1960_v46 = vadd.f32 1.0, %v2812_v43  ;;  %v2005_v39 = vadd.f32 %v2004_v55, %v1996_v61 }
 0x4ec   : > { %v2816_v3 = vpop.eup %2815  ;;  %v1970_v37 = vmul.f32 0.6931472, %v2814_v44  ;;  %2817 = vlog2.f32 %v1959_v13 }
 0x4ed   : > { %v1972_v17 = vmul.f32 0.6931472, %v2816_v3  ;;  %2819 = vlog2.f32 %v1960_v46 }
 0x4ee   : > { %v1981_v56 = vadd.f32 %v1970_v37, %v1917_v52 }
 0x4ef   : > { %v1982_v35 = vadd.f32 %v1972_v17, %v1918_v62 }
 0x4f0   : > { %v1997_v1 = vsub.f32 %v1981_v56, %v1989_v40 }
 0x4f1   : > { %v1998_v8 = vsub.f32 %v1982_v35, %v1990_v11 }
 0x4f2   : > { %v2818_v41 = vpop.eup %2817  ;;  %v2006_v6 = vadd.f32 %v2005_v39, %v1997_v1 }
 0x4f3   : > { %v2820_v23 = vpop.eup %2819  ;;  %v1974_v18 = vmul.f32 0.6931472, %v2818_v41 }
 0x4f4   : > { %v1976_v7 = vmul.f32 0.6931472, %v2820_v23  ;;  %v2007_v49 = vadd.f32 %v2006_v6, %v1998_v8 }
 0x4f5   : > { %v1983_v48 = vadd.f32 %v1974_v18, %v1919_v57 }
 0x4f6   : > { %v1984_v14 = vadd.f32 %v1976_v7, %v1920_v54 }
 0x4f7   : > { %v1999_v2 = vsub.f32 %v1983_v48, %v1991_v4 }
 0x4f8   : > { %v2000_v16 = vsub.f32 %v1984_v14, %v1992_v9 }
 0x4f9   : > { %v2008_v10 = vadd.f32 %v2007_v49, %v1999_v2  ;;  %2014 = sbr.rel (%p2504_p11) target bundleno = 1402 (0x57a), region = 104 }
 0x4fb   : > { %v2009_v58 = vadd.f32 %v2008_v10, %v2000_v16 }
 0x4fd   : > { %2010 = vst [vmem:[#allocation3] sm:$0xff] %v2009_v58 }
 0x4fe   : > { %vm2018_vm9 = vcmask 7168  }
 0x504   : > { %v2015_v28 = vld [vmem:[#allocation3] sm:$0xff] }
 0x505   : > { %2016 = vadd.xlane.f32.xlu0 %v2015_v28 }
 0x578   : > { %v2017_v19 = vpop.xlane.xlu0 %2016 }
 0x579   : > { %2019 = vst.msk [vmem:[%s677_s1] sm:$0xff] %vm2018_vm9, %v2017_v19 }
 0x57a PF: > { %s31_s18 = sadd.s32 1, %s3107_s18   ;;  %s4017_s20 = sld [smem:[#allocation19_spill]] }
 0x57b   : > { %p28_p12 = scmp.ge.s32.totalorder %s31_s18, 6   ;;  %s4018_s27 = sld [smem:[#allocation26_spill]] }
 0x57c   : > { %s4019_s22 = sld [smem:[#allocation20_spill]]  ;;  %s4024_s25 = smov %s3071_s26 }
 0x57d   : > { %s4020_s30 = sld [smem:[#allocation27_spill]]  ;;  %s4026_s28 = smov %s3083_s29 }
 0x57e   : > { %s4021_s15 = sld [smem:[#allocation23_spill]]  ;;  %s4028_s14 = smov %s3099_s16 }
 0x57f   : > { %s4022_s17 = sld [smem:[#allocation24_spill]] }
 0x580   : > { %s4023_s9 = sld [smem:[#allocation25_spill]]  ;;  %s4025_s26 = smov %s4017_s20 }
 0x582   : > { %s4027_s29 = smov %s4019_s22  ;;  %30 = sbr.rel (!%p28_p12) target bundleno = 24 (0x18), region = 169 }
 0x585   : > { %s4029_s16 = smov %s4022_s17 }
 0x586   : > { %s4030_s17 = smov %s4023_s9 }
 0x587   :  { %2039 = vsyncpa [#allocation5], 1 }
 0x588   :  { %2041 = vsyncpa [#allocation5 + $0x1], 1 }
 0x589   :  { %2042 = vsyncpa [#allocation7], 1 }
 0x58a   :  { %2043 = vsyncpa [#allocation10], 1 }
 0x58b   :  { %2045 = vsyncpa [#allocation10 + $0x1], 1 }
 0x58c   :  { %2046 = vsyncpa [#allocation13], 1 }
 0x58d   :  { %2048 = vsyncpa [#allocation13 + $0x1], 1 }

</bundles_post_ra>
